<compile_context>
chip_gen: v5e
topology: v5e:2x2
jax: 0.10.0
libtpu: 0.0.40
codegen_flags: <defaults>
</compile_context>

<pallas_src>
import functools

import jax
import jax.numpy as jnp
from jax.experimental import pallas as pl
from jax.experimental.pallas import tpu as pltpu

IN_DIM = 28 * 28   # 784
HID = 64
OUT = 10
HID_PAD = 128      # pad hidden/output features to a full 128-lane vreg
TILE_B_MAX = 1024  # batch tile (MXU M dim); multiple of 256


def _round_up(n, m):
    return ((n + m - 1) // m) * m


def mlp_kernel(x_ref, w1_ref, b1_ref, w2_ref, b2_ref, w3_ref, b3_ref,
               w4_ref, b4_ref, o_ref):
    # input_layer: Linear(784, 64->padded 128) + ReLU  (bf16 MXU, f32 accumulate)
    h = jnp.dot(x_ref[...], w1_ref[...], preferred_element_type=jnp.float32)
    h = jnp.maximum(h + b1_ref[...], 0.0)
    # hidden_layer: two Linear(64,64) + ReLU (padded to 128 lanes; pads stay 0)
    h = jnp.dot(h.astype(jnp.bfloat16), w2_ref[...],
                preferred_element_type=jnp.float32)
    h = jnp.maximum(h + b2_ref[...], 0.0)
    h = jnp.dot(h.astype(jnp.bfloat16), w3_ref[...],
                preferred_element_type=jnp.float32)
    h = jnp.maximum(h + b3_ref[...], 0.0)
    # output_layer: Linear(64, 10) padded to 128 lanes -> lane-dense store
    o_ref[...] = (jnp.dot(h.astype(jnp.bfloat16), w4_ref[...],
                          preferred_element_type=jnp.float32) + b4_ref[...])


def _pad2d(a, rows, cols, dtype):
    r, c = a.shape
    return jnp.pad(a.astype(dtype), ((0, rows - r), (0, cols - c)))


@jax.jit
def mlp_mnist_forward(x_nchw, params):
    """x_nchw: (B, 1, 28, 28) float32. Returns (B, 10) f32 logits."""
    B = x_nchw.shape[0]
    # Batch tile: multiple of 256 for the MXU M dim, capped; pad B up to a tile.
    tile_b = min(TILE_B_MAX, _round_up(B, 256))
    Bp = _round_up(B, tile_b)

    # nn.Flatten() keeps batch, flattens C*H*W row-major; stream x as bf16.
    x2d = x_nchw.reshape(B, IN_DIM).astype(jnp.bfloat16)
    x2d = jnp.pad(x2d, ((0, Bp - B), (0, 0)))

    (w1, b1), (w2, b2), (w3, b3), (w4, b4) = params
    # Weights stored (in, out): y = x @ W + b == PyTorch x @ W.T with W (out,in).
    # Zero-pad feature dims to 128; zero pads propagate zeros through ReLU so
    # the math is unchanged.
    w1p = _pad2d(w1, IN_DIM, HID_PAD, jnp.bfloat16)
    w2p = _pad2d(w2, HID_PAD, HID_PAD, jnp.bfloat16)
    w3p = _pad2d(w3, HID_PAD, HID_PAD, jnp.bfloat16)
    w4p = _pad2d(w4, HID_PAD, HID_PAD, jnp.bfloat16)
    b1p = _pad2d(b1, 1, HID_PAD, jnp.float32)
    b2p = _pad2d(b2, 1, HID_PAD, jnp.float32)
    b3p = _pad2d(b3, 1, HID_PAD, jnp.float32)
    b4p = _pad2d(b4, 1, HID_PAD, jnp.float32)

    def resident(shape):  # same block every grid step -> stays VMEM-resident
        return pl.BlockSpec(shape, lambda i: (0, 0))

    out = pl.pallas_call(
        mlp_kernel,
        out_shape=jax.ShapeDtypeStruct((Bp, HID_PAD), jnp.float32),
        grid=(Bp // tile_b,),
        in_specs=[
            pl.BlockSpec((tile_b, IN_DIM), lambda i: (i, 0)),   # streamed x tile
            resident((IN_DIM, HID_PAD)), resident((1, HID_PAD)),
            resident((HID_PAD, HID_PAD)), resident((1, HID_PAD)),
            resident((HID_PAD, HID_PAD)), resident((1, HID_PAD)),
            resident((HID_PAD, HID_PAD)), resident((1, HID_PAD)),
        ],
        out_specs=pl.BlockSpec((tile_b, HID_PAD), lambda i: (i, 0)),
        compiler_params=pltpu.CompilerParams(
            dimension_semantics=("parallel",),        # megacore on v7x
            vmem_limit_bytes=32 * 1024 * 1024,        # safe vs v7x 64 MiB VMEM
        ),
    )(x2d, w1p, b1p, w2p, b2p, w3p, b3p, w4p, b4p)

    return out[:B, :OUT]


def init_params(key):
    """PyTorch-style uniform(-1/sqrt(fan_in), 1/sqrt(fan_in)) init."""
    dims = [(IN_DIM, HID), (HID, HID), (HID, HID), (HID, OUT)]
    params = []
    for fan_in, fan_out in dims:
        key, kw, kb = jax.random.split(key, 3)
        bound = 1.0 / (fan_in ** 0.5)
        w = jax.random.uniform(kw, (fan_in, fan_out), jnp.float32, -bound, bound)
        b = jax.random.uniform(kb, (1, fan_out), jnp.float32, -bound, bound)
        params.append((w, b))
    return params


def reference_forward(x_nchw, params):
    """Plain-JAX f32 reference of the PyTorch forward pass."""
    B = x_nchw.shape[0]
    h = x_nchw.reshape(B, IN_DIM)
    (w1, b1), (w2, b2), (w3, b3), (w4, b4) = params
    h = jnp.maximum(h @ w1 + b1, 0.0)
    h = jnp.maximum(h @ w2 + b2, 0.0)
    h = jnp.maximum(h @ w3 + b3, 0.0)
    return h @ w4 + b4


if __name__ == "__main__":
    key = jax.random.PRNGKey(0)
    key, kx = jax.random.split(key)

    B = 2
    x = jax.random.normal(kx, (B, 1, 28, 28), jnp.float32)  # NCHW MNIST-shaped
    params = init_params(key)

    out = mlp_mnist_forward(x, params)
    out = jax.block_until_ready(out)

    ref = reference_forward(x, params)
    assert out.shape == (B, OUT)
    # bf16 inputs/weights with f32 accumulation -> loose tolerance vs f32 ref.
    assert jnp.allclose(out, ref, atol=2e-2, rtol=2e-2), (
        float(jnp.max(jnp.abs(out - ref))))

    print("KERNEL_OK")
</pallas_src>

<mosaic_0001>
module attributes {stable_mosaic.version = 11 : i64} {
  func.func @mlp_kernel(%arg0: i32, %arg1: memref<256x784xbf16, #tpu.memory_space<vmem>>, %arg2: memref<784x128xbf16, #tpu.memory_space<vmem>>, %arg3: memref<1x128xf32, #tpu.memory_space<vmem>>, %arg4: memref<128x128xbf16, #tpu.memory_space<vmem>>, %arg5: memref<1x128xf32, #tpu.memory_space<vmem>>, %arg6: memref<128x128xbf16, #tpu.memory_space<vmem>>, %arg7: memref<1x128xf32, #tpu.memory_space<vmem>>, %arg8: memref<128x128xbf16, #tpu.memory_space<vmem>>, %arg9: memref<1x128xf32, #tpu.memory_space<vmem>>, %arg10: memref<256x128xf32, #tpu.memory_space<vmem>>) attributes {dimension_semantics = [#tpu.dimension_semantics<parallel>], iteration_bounds = array<i64: 1>, scalar_prefetch = 0 : i64, scratch_operands = 0 : i64, tpu.core_type = #tpu.core_type<tc>, window_params = [{transform_indices = @transform_0, window_bounds = array<i64: 256, 784>}, {pipeline_mode = #tpu.pipeline_mode<synchronous>, transform_indices = @transform_1, window_bounds = array<i64: 784, 128>}, {pipeline_mode = #tpu.pipeline_mode<synchronous>, transform_indices = @transform_2, window_bounds = array<i64: 1, 128>}, {pipeline_mode = #tpu.pipeline_mode<synchronous>, transform_indices = @transform_3, window_bounds = array<i64: 128, 128>}, {pipeline_mode = #tpu.pipeline_mode<synchronous>, transform_indices = @transform_4, window_bounds = array<i64: 1, 128>}, {pipeline_mode = #tpu.pipeline_mode<synchronous>, transform_indices = @transform_5, window_bounds = array<i64: 128, 128>}, {pipeline_mode = #tpu.pipeline_mode<synchronous>, transform_indices = @transform_6, window_bounds = array<i64: 1, 128>}, {pipeline_mode = #tpu.pipeline_mode<synchronous>, transform_indices = @transform_7, window_bounds = array<i64: 128, 128>}, {pipeline_mode = #tpu.pipeline_mode<synchronous>, transform_indices = @transform_8, window_bounds = array<i64: 1, 128>}, {transform_indices = @transform_9, window_bounds = array<i64: 256, 128>}]} {
    %c0 = arith.constant 0 : index
    %c0_0 = arith.constant 0 : index
    %0 = vector.load %arg1[%c0, %c0_0] : memref<256x784xbf16, #tpu.memory_space<vmem>>, vector<256x784xbf16>
    %c0_1 = arith.constant 0 : index
    %c0_2 = arith.constant 0 : index
    %1 = vector.load %arg2[%c0_1, %c0_2] : memref<784x128xbf16, #tpu.memory_space<vmem>>, vector<784x128xbf16>
    %cst = arith.constant dense<0.000000e+00> : vector<256x128xf32>
    %2 = tpu.matmul %0, %1, %cst {dimension_numbers = #tpu.dot_dimension_numbers<[1], [0], [0], [1], [0, 0, 1, 1], [], []>} : vector<256x784xbf16>, vector<784x128xbf16>, vector<256x128xf32> -> vector<256x128xf32>
    %c0_3 = arith.constant 0 : index
    %c0_4 = arith.constant 0 : index
    %3 = vector.load %arg3[%c0_3, %c0_4] : memref<1x128xf32, #tpu.memory_space<vmem>>, vector<1x128xf32>
    %4 = vector.broadcast %3 : vector<1x128xf32> to vector<256x128xf32>
    %5 = arith.addf %2, %4 : vector<256x128xf32>
    %cst_5 = arith.constant 0.000000e+00 : f32
    %6 = vector.broadcast %cst_5 : f32 to vector<256x128xf32>
    %7 = arith.maximumf %5, %6 : vector<256x128xf32>
    %8 = arith.truncf %7 : vector<256x128xf32> to vector<256x128xbf16>
    %c0_6 = arith.constant 0 : index
    %c0_7 = arith.constant 0 : index
    %9 = vector.load %arg4[%c0_6, %c0_7] : memref<128x128xbf16, #tpu.memory_space<vmem>>, vector<128x128xbf16>
    %cst_8 = arith.constant dense<0.000000e+00> : vector<256x128xf32>
    %10 = tpu.matmul %8, %9, %cst_8 {dimension_numbers = #tpu.dot_dimension_numbers<[1], [0], [0], [1], [0, 0, 1, 1], [], []>} : vector<256x128xbf16>, vector<128x128xbf16>, vector<256x128xf32> -> vector<256x128xf32>
    %c0_9 = arith.constant 0 : index
    %c0_10 = arith.constant 0 : index
    %11 = vector.load %arg5[%c0_9, %c0_10] : memref<1x128xf32, #tpu.memory_space<vmem>>, vector<1x128xf32>
    %12 = vector.broadcast %11 : vector<1x128xf32> to vector<256x128xf32>
    %13 = arith.addf %10, %12 : vector<256x128xf32>
    %cst_11 = arith.constant 0.000000e+00 : f32
    %14 = vector.broadcast %cst_11 : f32 to vector<256x128xf32>
    %15 = arith.maximumf %13, %14 : vector<256x128xf32>
    %16 = arith.truncf %15 : vector<256x128xf32> to vector<256x128xbf16>
    %c0_12 = arith.constant 0 : index
    %c0_13 = arith.constant 0 : index
    %17 = vector.load %arg6[%c0_12, %c0_13] : memref<128x128xbf16, #tpu.memory_space<vmem>>, vector<128x128xbf16>
    %cst_14 = arith.constant dense<0.000000e+00> : vector<256x128xf32>
    %18 = tpu.matmul %16, %17, %cst_14 {dimension_numbers = #tpu.dot_dimension_numbers<[1], [0], [0], [1], [0, 0, 1, 1], [], []>} : vector<256x128xbf16>, vector<128x128xbf16>, vector<256x128xf32> -> vector<256x128xf32>
    %c0_15 = arith.constant 0 : index
    %c0_16 = arith.constant 0 : index
    %19 = vector.load %arg7[%c0_15, %c0_16] : memref<1x128xf32, #tpu.memory_space<vmem>>, vector<1x128xf32>
    %20 = vector.broadcast %19 : vector<1x128xf32> to vector<256x128xf32>
    %21 = arith.addf %18, %20 : vector<256x128xf32>
    %cst_17 = arith.constant 0.000000e+00 : f32
    %22 = vector.broadcast %cst_17 : f32 to vector<256x128xf32>
    %23 = arith.maximumf %21, %22 : vector<256x128xf32>
    %24 = arith.truncf %23 : vector<256x128xf32> to vector<256x128xbf16>
    %c0_18 = arith.constant 0 : index
    %c0_19 = arith.constant 0 : index
    %25 = vector.load %arg8[%c0_18, %c0_19] : memref<128x128xbf16, #tpu.memory_space<vmem>>, vector<128x128xbf16>
    %cst_20 = arith.constant dense<0.000000e+00> : vector<256x128xf32>
    %26 = tpu.matmul %24, %25, %cst_20 {dimension_numbers = #tpu.dot_dimension_numbers<[1], [0], [0], [1], [0, 0, 1, 1], [], []>} : vector<256x128xbf16>, vector<128x128xbf16>, vector<256x128xf32> -> vector<256x128xf32>
    %c0_21 = arith.constant 0 : index
    %c0_22 = arith.constant 0 : index
    %27 = vector.load %arg9[%c0_21, %c0_22] : memref<1x128xf32, #tpu.memory_space<vmem>>, vector<1x128xf32>
    %28 = vector.broadcast %27 : vector<1x128xf32> to vector<256x128xf32>
    %29 = arith.addf %26, %28 : vector<256x128xf32>
    %c0_23 = arith.constant 0 : index
    %c0_24 = arith.constant 0 : index
    %30 = vector.load %arg10[%c0_23, %c0_24] : memref<256x128xf32, #tpu.memory_space<vmem>>, vector<256x128xf32>
    tpu.vector_store %arg10[%c0_23, %c0_24], %29 {strides = array<i32>} : memref<256x128xf32, #tpu.memory_space<vmem>>, vector<256x128xf32>,
    return
  }
  func.func @transform_0(%arg0: i32) -> (i32, i32) {
    %c0_i32 = arith.constant 0 : i32
    %c0_i32_0 = arith.constant 0 : i32
    return %arg0, %c0_i32 : i32, i32
  }
  func.func @transform_1(%arg0: i32) -> (i32, i32) {
    %c0_i32 = arith.constant 0 : i32
    %c0_i32_0 = arith.constant 0 : i32
    %c0_i32_1 = arith.constant 0 : i32
    return %c0_i32, %c0_i32_0 : i32, i32
  }
  func.func @transform_2(%arg0: i32) -> (i32, i32) {
    %c0_i32 = arith.constant 0 : i32
    %c0_i32_0 = arith.constant 0 : i32
    %c0_i32_1 = arith.constant 0 : i32
    return %c0_i32, %c0_i32_0 : i32, i32
  }
  func.func @transform_3(%arg0: i32) -> (i32, i32) {
    %c0_i32 = arith.constant 0 : i32
    %c0_i32_0 = arith.constant 0 : i32
    %c0_i32_1 = arith.constant 0 : i32
    return %c0_i32, %c0_i32_0 : i32, i32
  }
  func.func @transform_4(%arg0: i32) -> (i32, i32) {
    %c0_i32 = arith.constant 0 : i32
    %c0_i32_0 = arith.constant 0 : i32
    %c0_i32_1 = arith.constant 0 : i32
    return %c0_i32, %c0_i32_0 : i32, i32
  }
  func.func @transform_5(%arg0: i32) -> (i32, i32) {
    %c0_i32 = arith.constant 0 : i32
    %c0_i32_0 = arith.constant 0 : i32
    %c0_i32_1 = arith.constant 0 : i32
    return %c0_i32, %c0_i32_0 : i32, i32
  }
  func.func @transform_6(%arg0: i32) -> (i32, i32) {
    %c0_i32 = arith.constant 0 : i32
    %c0_i32_0 = arith.constant 0 : i32
    %c0_i32_1 = arith.constant 0 : i32
    return %c0_i32, %c0_i32_0 : i32, i32
  }
  func.func @transform_7(%arg0: i32) -> (i32, i32) {
    %c0_i32 = arith.constant 0 : i32
    %c0_i32_0 = arith.constant 0 : i32
    %c0_i32_1 = arith.constant 0 : i32
    return %c0_i32, %c0_i32_0 : i32, i32
  }
  func.func @transform_8(%arg0: i32) -> (i32, i32) {
    %c0_i32 = arith.constant 0 : i32
    %c0_i32_0 = arith.constant 0 : i32
    %c0_i32_1 = arith.constant 0 : i32
    return %c0_i32, %c0_i32_0 : i32, i32
  }
  func.func @transform_9(%arg0: i32) -> (i32, i32) {
    %c0_i32 = arith.constant 0 : i32
    %c0_i32_0 = arith.constant 0 : i32
    return %arg0, %c0_i32 : i32, i32
  }
}

</mosaic_0001>

<bundles_post_ra>
// kernel: mlp_mnist_forward.1
= control target key start
LH: loop header
LB: loop body
LE: loop exit
PB: predicated region body
PF: predicated region fallthrough
CT: control target
= control target key end

     0   :  { %vm1117_vm0 = vcmask 130048   ;;  %s4845_s1 = inlined_call_operand.vmem [shape: bf16[784,128], index: 1, kind: input, shape index: {}]   ;;  %s4846_s0 = inlined_call_operand.vmem [shape: bf16[256,784], index: 0, kind: input, shape index: {}]   ;;  %s4847_s2 = inlined_call_operand.vmem [shape: f32[1,128], index: 2, kind: input, shape index: {}]   ;;  %s4848_s3 = inlined_call_operand.vmem [shape: bf16[128,128], index: 3, kind: input, shape index: {}]   ;;  %s4849_s5 = inlined_call_operand.vmem [shape: bf16[128,128], index: 5, kind: input, shape index: {}]   ;;  %s4850_s7 = inlined_call_operand.vmem [shape: bf16[128,128], index: 7, kind: input, shape index: {}]   ;;  %s4851_s4 = inlined_call_operand.vmem [shape: f32[1,128], index: 4, kind: input, shape index: {}]   ;;  %s4852_s6 = inlined_call_operand.vmem [shape: f32[1,128], index: 6, kind: input, shape index: {}]   ;;  %s4853_s8 = inlined_call_operand.vmem [shape: f32[1,128], index: 8, kind: input, shape index: {}]   ;;  %s4854_s9 = inlined_call_operand.vmem [shape: f32[256,128], index: 9, kind: output, shape index: {}]  }
   0x1   :  { %v3315_v0 = vld [vmem:[%s4845_s1 + $0x38] sm:$0xff]  ;;  %v3314_v2 = vld [vmem:[%s4845_s1 + $0x30] sm:$0xff]  ;;  %v3313_v4 = vld [vmem:[%s4845_s1 + $0x28] sm:$0xff] }
   0x2   :  { %v3323_v1 = vld [vmem:[%s4845_s1 + $0x78] sm:$0xff]  ;;  %3381 = vmatpush.bf16.msra.mxu2 %v3315_v0  ;;  %v3322_v3 = vld [vmem:[%s4845_s1 + $0x70] sm:$0xff]  ;;  %1166 = vmatpush.bf16.msra.mxu0 %v3315_v0  ;;  %v3321_v5 = vld [vmem:[%s4845_s1 + $0x68] sm:$0xff] }
   0x3   :  { %3389 = vmatpush.bf16.msra.mxu3 %v3323_v1  ;;  %1255 = vmatpush.bf16.msra.mxu1 %v3323_v1  ;;  %v3312_v6 = vld [vmem:[%s4845_s1 + $0x20] sm:$0xff]  ;;  %v3311_v8 = vld [vmem:[%s4845_s1 + $0x18] sm:$0xff]  ;;  %v3310_v10 = vld [vmem:[%s4845_s1 + $0x10] sm:$0xff] }
   0x4   :  { %v3320_v7 = vld [vmem:[%s4845_s1 + $0x60] sm:$0xff]  ;;  %v3319_v9 = vld [vmem:[%s4845_s1 + $0x58] sm:$0xff]  ;;  %v3318_v11 = vld [vmem:[%s4845_s1 + $0x50] sm:$0xff] }
   0x5   :  { %v3309_v12 = vld [vmem:[%s4845_s1 + $0x8] sm:$0xff]  ;;  %v3308_v14 = vld [vmem:[%s4845_s1] sm:$0xff]  ;;  %v3255_v17 = vld [vmem:[%s4846_s0 + $0x1d8] sm:$0xf0] }
   0x6   :  { %3382 = vmatpush.bf16.msra.mxu2 %v3314_v2  ;;  %1167 = vmatpush.bf16.msra.mxu0 %v3314_v2  ;;  %v3317_v13 = vld [vmem:[%s4845_s1 + $0x48] sm:$0xff]  ;;  %v3316_v15 = vld [vmem:[%s4845_s1 + $0x40] sm:$0xff]  ;;  %v3331_v20 = vld [vmem:[%s4845_s1 + $0xb8] sm:$0xff] }
   0x7   :  { %3390 = vmatpush.bf16.msra.mxu3 %v3322_v3  ;;  %1256 = vmatpush.bf16.msra.mxu1 %v3322_v3  ;;  %v2666_v16 = vld [vmem:[%s4846_s0 + $0x1c0] sm:$0xf]  ;;  %v3252_v18 = vld [vmem:[%s4846_s0 + $0x1c4] sm:$0xf]  ;;  %v3199_v22 = vld [vmem:[%s4846_s0 + $0x18] sm:$0xf0] }
   0x8   :  { %v2668_v19 = vld [vmem:[%s4846_s0 + $0x1dc] sm:$0xf0]  ;;  %v3196_v23 = vld [vmem:[%s4846_s0 + $0x4] sm:$0xf]  ;;  %v2667_v25 = vor.u32 %v3255_v17, %v2666_v16  ;;  %v3330_v29 = vld [vmem:[%s4845_s1 + $0xb0] sm:$0xff] }
   0x9   :  { %v2442_v21 = vld [vmem:[%s4846_s0] sm:$0xf]  ;;  %v2671_v26 = vor.u32 %v3252_v18, %v2668_v19  ;;  %v3329_v30 = vld [vmem:[%s4845_s1 + $0xa8] sm:$0xff]  ;;  %v2694_v31 = vld [vmem:[%s4846_s0 + $0x1f8] sm:$0xf] }
   0xa   :  { %3383 = vmatpush.bf16.msra.mxu2 %v3313_v4  ;;  %1168 = vmatpush.bf16.msra.mxu0 %v3313_v4  ;;  %v2444_v24 = vld [vmem:[%s4846_s0 + $0x1c] sm:$0xf0]  ;;  %v2443_v27 = vor.u32 %v3199_v22, %v2442_v21  ;;  %v3262_v32 = vld [vmem:[%s4846_s0 + $0x210] sm:$0xf0]  ;;  %v3259_v33 = vld [vmem:[%s4846_s0 + $0x1fc] sm:$0xf] }
   0xb   :  { %3391 = vmatpush.bf16.msra.mxu3 %v3321_v5  ;;  %1257 = vmatpush.bf16.msra.mxu1 %v3321_v5  ;;  %v2447_v28 = vor.u32 %v3196_v23, %v2444_v24  ;;  %v2696_v34 = vld [vmem:[%s4846_s0 + $0x214] sm:$0xf0]  ;;  %v3206_v36 = vld [vmem:[%s4846_s0 + $0x50] sm:$0xf0]  ;;  %v3203_v37 = vld [vmem:[%s4846_s0 + $0x3c] sm:$0xf]  ;;  %v2695_v39 = vor.u32 %v3262_v32, %v2694_v31 }
   0xc   :  { %v2470_v35 = vld [vmem:[%s4846_s0 + $0x38] sm:$0xf]  ;;  %v2699_v40 = vor.u32 %v3259_v33, %v2696_v34  ;;  %v3328_v43 = vld [vmem:[%s4845_s1 + $0xa0] sm:$0xff]  ;;  %v2722_v44 = vld [vmem:[%s4846_s0 + $0x230] sm:$0xf] }
   0xd   :  { %v2472_v38 = vld [vmem:[%s4846_s0 + $0x54] sm:$0xf0]  ;;  %v2471_v41 = vor.u32 %v3206_v36, %v2470_v35  ;;  %v3269_v45 = vld [vmem:[%s4846_s0 + $0x248] sm:$0xf0]  ;;  %v3266_v46 = vld [vmem:[%s4846_s0 + $0x234] sm:$0xf] }
   0xe   :  { %3384 = vmatpush.bf16.msra.mxu2 %v3312_v6  ;;  %1169 = vmatpush.bf16.msra.mxu0 %v3312_v6  ;;  %v2475_v42 = vor.u32 %v3203_v37, %v2472_v38  ;;  %v2724_v47 = vld [vmem:[%s4846_s0 + $0x24c] sm:$0xf0]  ;;  %v3213_v49 = vld [vmem:[%s4846_s0 + $0x88] sm:$0xf0]  ;;  %v3210_v50 = vld [vmem:[%s4846_s0 + $0x74] sm:$0xf]  ;;  %v2723_v52 = vor.u32 %v3269_v45, %v2722_v44 }
   0xf   :  { %3392 = vmatpush.bf16.msra.mxu3 %v3320_v7  ;;  %1258 = vmatpush.bf16.msra.mxu1 %v3320_v7  ;;  %v2498_v48 = vld [vmem:[%s4846_s0 + $0x70] sm:$0xf]  ;;  %v2727_v53 = vor.u32 %v3266_v46, %v2724_v47  ;;  %v3327_v56 = vld [vmem:[%s4845_s1 + $0x98] sm:$0xff]  ;;  %v2750_v57 = vld [vmem:[%s4846_s0 + $0x268] sm:$0xf] }
  0x10   :  { %v2500_v51 = vld [vmem:[%s4846_s0 + $0x8c] sm:$0xf0]  ;;  %v2499_v54 = vor.u32 %v3213_v49, %v2498_v48  ;;  %v3276_v58 = vld [vmem:[%s4846_s0 + $0x280] sm:$0xf0]  ;;  %v3273_v59 = vld [vmem:[%s4846_s0 + $0x26c] sm:$0xf] }
  0x11   :  { %v2503_v55 = vor.u32 %v3210_v50, %v2500_v51  ;;  %v2752_v60 = vld [vmem:[%s4846_s0 + $0x284] sm:$0xf0]  ;;  %v3220_v62 = vld [vmem:[%s4846_s0 + $0xc0] sm:$0xf0]  ;;  %v3217_v63 = vld [vmem:[%s4846_s0 + $0xac] sm:$0xf]  ;;  %v2751_v1 = vor.u32 %v3276_v58, %v2750_v57 }
  0x12   :  { %3385 = vmatpush.bf16.msra.mxu2 %v3311_v8  ;;  %1170 = vmatpush.bf16.msra.mxu0 %v3311_v8  ;;  %v2526_v61 = vld [vmem:[%s4846_s0 + $0xa8] sm:$0xf]  ;;  %v2755_v2 = vor.u32 %v3273_v59, %v2752_v60  ;;  %v3326_v5 = vld [vmem:[%s4845_s1 + $0x90] sm:$0xff]  ;;  %v2778_v6 = vld [vmem:[%s4846_s0 + $0x2a0] sm:$0xf] }
  0x13   :  { %3393 = vmatpush.bf16.msra.mxu3 %v3319_v9  ;;  %1259 = vmatpush.bf16.msra.mxu1 %v3319_v9  ;;  %v2528_v0 = vld [vmem:[%s4846_s0 + $0xc4] sm:$0xf0]  ;;  %v2527_v3 = vor.u32 %v3220_v62, %v2526_v61  ;;  %v3283_v7 = vld [vmem:[%s4846_s0 + $0x2b8] sm:$0xf0]  ;;  %v3280_v8 = vld [vmem:[%s4846_s0 + $0x2a4] sm:$0xf] }
  0x14   :  { %v2531_v4 = vor.u32 %v3217_v63, %v2528_v0  ;;  %v2780_v9 = vld [vmem:[%s4846_s0 + $0x2bc] sm:$0xf0]  ;;  %v3325_v18 = vld [vmem:[%s4845_s1 + $0x88] sm:$0xff]  ;;  %v3339_v19 = vld [vmem:[%s4845_s1 + $0xf8] sm:$0xff] }
  0x15   :  { %v3338_v21 = vld [vmem:[%s4845_s1 + $0xf0] sm:$0xff]  ;;  %v3355_v22 = vld [vmem:[%s4845_s1 + $0x178] sm:$0xff]  ;;  %v3337_v24 = vld [vmem:[%s4845_s1 + $0xe8] sm:$0xff] }
  0x16   :  { %3386 = vmatpush.bf16.msra.mxu2 %v3310_v10  ;;  %1171 = vmatpush.bf16.msra.mxu0 %v3310_v10  ;;  %v2554_v10 = vld [vmem:[%s4846_s0 + $0xe0] sm:$0xf]  ;;  %v3346_v23 = vld [vmem:[%s4845_s1 + $0x130] sm:$0xff]  ;;  %v3231_v31 = vld [vmem:[%s4846_s0 + $0x11c] sm:$0xf] }
  0x17   :  { %3394 = vmatpush.bf16.msra.mxu3 %v3318_v11  ;;  %1260 = vmatpush.bf16.msra.mxu1 %v3318_v11  ;;  %v3227_v11 = vld [vmem:[%s4846_s0 + $0xf8] sm:$0xf0]  ;;  %v2584_v32 = vld [vmem:[%s4846_s0 + $0x134] sm:$0xf0]  ;;  %v3336_v33 = vld [vmem:[%s4845_s1 + $0xe0] sm:$0xff] }
  0x18   :  { %v2555_v16 = vor.u32 %v3227_v11, %v2554_v10  ;;  %v2587_v37 = vor.u32 %v3231_v31, %v2584_v32  ;;  %v3354_v38 = vld [vmem:[%s4845_s1 + $0x170] sm:$0xff]  ;;  %v3344_v44 = vld [vmem:[%s4845_s1 + $0x120] sm:$0xff]  ;;  %v3333_v46 = vld [vmem:[%s4845_s1 + $0xc8] sm:$0xff] }
  0x19   :  { %v3352_v45 = vld [vmem:[%s4845_s1 + $0x160] sm:$0xff]  ;;  %v3343_v47 = vld [vmem:[%s4845_s1 + $0x118] sm:$0xff]  ;;  %v2834_v48 = vld [vmem:[%s4846_s0 + $0x310] sm:$0xf] }
  0x1a   :  { %3387 = vmatpush.bf16.msra.mxu2 %v3309_v12  ;;  %1172 = vmatpush.bf16.msra.mxu0 %v3309_v12  ;;  %v3224_v12 = vld [vmem:[%s4846_s0 + $0xe4] sm:$0xf]  ;;  %v3297_v49 = vld [vmem:[%s4846_s0 + $0x328] sm:$0xf0]  ;;  %v3294_v50 = vld [vmem:[%s4846_s0 + $0x314] sm:$0xf] }
  0x1b   :  { %3395 = vmatpush.bf16.msra.mxu3 %v3317_v13  ;;  %1261 = vmatpush.bf16.msra.mxu1 %v3317_v13  ;;  %v2556_v13 = vld [vmem:[%s4846_s0 + $0xfc] sm:$0xf0]  ;;  %v2836_v51 = vld [vmem:[%s4846_s0 + $0x32c] sm:$0xf0]  ;;  %v2835_v59 = vor.u32 %v3297_v49, %v2834_v48  ;;  %v3248_v10 = vld [vmem:[%s4846_s0 + $0x1a0] sm:$0xf0] }
  0x1c   :  { %v2559_v17 = vor.u32 %v3224_v12, %v2556_v13  ;;  %v3332_v57 = vld [vmem:[%s4845_s1 + $0xc0] sm:$0xff]  ;;  %v3342_v58 = vld [vmem:[%s4845_s1 + $0x110] sm:$0xff]  ;;  %v2839_v60 = vor.u32 %v3294_v50, %v2836_v51  ;;  %v3245_v11 = vld [vmem:[%s4846_s0 + $0x18c] sm:$0xf] }
  0x1d   :  { %v3350_v63 = vld [vmem:[%s4845_s1 + $0x150] sm:$0xff]  ;;  %v3356_v0 = vld [vmem:[%s4845_s1 + $0x180] sm:$0xff]  ;;  %v2640_v12 = vld [vmem:[%s4846_s0 + $0x1a4] sm:$0xf0] }
  0x1e   :  { %3388 = vmatpush.bf16.msra.mxu2 %v3308_v14  ;;  %1173 = vmatpush.bf16.msra.mxu0 %v3308_v14  ;;  %v2779_v14 = vor.u32 %v3283_v7, %v2778_v6  ;;  %v3304_v6 = vld [vmem:[%s4846_s0 + $0x360] sm:$0xf0]  ;;  %v3301_v7 = vld [vmem:[%s4846_s0 + $0x34c] sm:$0xf]  ;;  %v2488_v51 = vld [vmem:[%s4846_s0 + $0x64] sm:$0xf0] }
  0x1f   :  { %3396 = vmatpush.bf16.msra.mxu3 %v3316_v15  ;;  %1262 = vmatpush.bf16.msra.mxu1 %v3316_v15  ;;  %v2783_v15 = vor.u32 %v3280_v8, %v2780_v9  ;;  %v2864_v8 = vld [vmem:[%s4846_s0 + $0x364] sm:$0xf0]  ;;  %v3205_v50 = vld [vmem:[%s4846_s0 + $0x4c] sm:$0xf] }
  0x20   :  { %v2638_v9 = vld [vmem:[%s4846_s0 + $0x188] sm:$0xf] }
  0x21   :  { %1214 = vmatmul.bf16.vlgmr.msra.gmra.mxu2 %v2667_v25  ;;  %1174 = vmatmul.bf16.vlgmr.msra.gmra.mxu0 %v2443_v27  ;;  %v2806_v25 = vld [vmem:[%s4846_s0 + $0x2d8] sm:$0xf]  ;;  %v3287_v27 = vld [vmem:[%s4846_s0 + $0x2dc] sm:$0xf] }
  0x22   :  { %1344 = vmatpush.bf16.msrb.mxu2 %v3331_v20  ;;  %1303 = vmatmul.bf16.vlgmr.msra.gmra.mxu3 %v2671_v26  ;;  %v3347_v20 = vld [vmem:[%s4845_s1 + $0x138] sm:$0xff]  ;;  %v3290_v26 = vld [vmem:[%s4846_s0 + $0x2f0] sm:$0xf0] }
  0x23   :  { %1263 = vmatmul.bf16.vlgmr.msra.gmra.mxu1 %v2447_v28  ;;  %1433 = vmatpush.bf16.msrb.mxu3 %v3339_v19  ;;  %v2808_v28 = vld [vmem:[%s4846_s0 + $0x2f4] sm:$0xf0]  ;;  %v2807_v34 = vor.u32 %v3290_v26, %v2806_v25  ;;  %v3197_v19 = vld [vmem:[%s4846_s0 + $0xc] sm:$0xf] }
  0x24   :  { %1522 = vmatpush.bf16.msrb.mxu0 %v3347_v20  ;;  %1611 = vmatpush.bf16.msrb.mxu1 %v3355_v22  ;;  %v2811_v35 = vor.u32 %v3287_v27, %v2808_v28  ;;  %v2452_v20 = vld [vmem:[%s4846_s0 + $0x24] sm:$0xf0]  ;;  %v3201_v22 = vld [vmem:[%s4846_s0 + $0x28] sm:$0xf0]  ;;  %v3817_v27 = vld [vmem:[%s4847_s2] ss:$0 sm:$0xff] }
  0x25   :  { %v2455_v26 = vor.u32 %v3197_v19, %v2452_v20 }
  0x26   :  { %1345 = vmatpush.bf16.msrb.mxu2 %v3330_v29  ;;  %v2582_v29 = vld [vmem:[%s4846_s0 + $0x118] sm:$0xf] }
  0x27   :  { %1434 = vmatpush.bf16.msrb.mxu3 %v3338_v21  ;;  %v2458_v21 = vld [vmem:[%s4846_s0 + $0x10] sm:$0xf] }
  0x28   :  { %1523 = vmatpush.bf16.msrb.mxu0 %v3346_v23  ;;  %1612 = vmatpush.bf16.msrb.mxu1 %v3354_v38  ;;  %v3198_v23 = vld [vmem:[%s4846_s0 + $0x14] sm:$0xf]  ;;  %v2459_v28 = vor.u32 %v3201_v22, %v2458_v21 }
  0x2a   :  { %1346 = vmatpush.bf16.msrb.mxu2 %v3329_v30  ;;  %v3234_v30 = vld [vmem:[%s4846_s0 + $0x130] sm:$0xf0] }
  0x2b   :  { %1435 = vmatpush.bf16.msrb.mxu3 %v3337_v24  ;;  %v2583_v36 = vor.u32 %v3234_v30, %v2582_v29  ;;  %v2460_v24 = vld [vmem:[%s4846_s0 + $0x2c] sm:$0xf0] }
  0x2c   :  { %v2463_v30 = vor.u32 %v3198_v23, %v2460_v24 }
  0x2e   :  { %1347 = vmatpush.bf16.msrb.mxu2 %v3328_v43  ;;  %v3334_v43 = vld [vmem:[%s4845_s1 + $0xd0] sm:$0xff] }
  0x2f   :  { %1436 = vmatpush.bf16.msrb.mxu3 %v3336_v33 }
  0x31   :  { %1219 = vmatmul.bf16.gmra.mxu2 %v2695_v39  ;;  %1179 = vmatmul.bf16.gmra.mxu0 %v2471_v41  ;;  %v3324_v39 = vld [vmem:[%s4845_s1 + $0x80] sm:$0xff]  ;;  %v3345_v41 = vld [vmem:[%s4845_s1 + $0x128] sm:$0xff] }
  0x32   :  { %1308 = vmatmul.bf16.gmra.mxu3 %v2699_v40  ;;  %1348 = vmatpush.bf16.msrb.mxu2 %v3327_v56  ;;  %v3335_v40 = vld [vmem:[%s4845_s1 + $0xd8] sm:$0xff]  ;;  %v2612_v56 = vld [vmem:[%s4846_s0 + $0x16c] sm:$0xf0] }
  0x33   :  { %1268 = vmatmul.bf16.gmra.mxu1 %v2475_v42  ;;  %v3353_v42 = vld [vmem:[%s4845_s1 + $0x168] sm:$0xff]  ;;  %1437 = vmatpush.bf16.msrb.mxu3 %v3335_v40 }
  0x34   :  { %1524 = vmatpush.bf16.msrb.mxu0 %v3345_v41  ;;  %1613 = vmatpush.bf16.msrb.mxu1 %v3353_v42  ;;  %v2478_v41 = vld [vmem:[%s4846_s0 + $0x40] sm:$0xf]  ;;  %v3207_v42 = vld [vmem:[%s4846_s0 + $0x58] sm:$0xf0] }
  0x36   :  { %1349 = vmatpush.bf16.msrb.mxu2 %v3326_v5  ;;  %v2862_v5 = vld [vmem:[%s4846_s0 + $0x348] sm:$0xf] }
  0x37   :  { %1438 = vmatpush.bf16.msrb.mxu3 %v3334_v43  ;;  %v2863_v13 = vor.u32 %v3304_v6, %v2862_v5  ;;  %v2506_v5 = vld [vmem:[%s4846_s0 + $0x78] sm:$0xf]  ;;  %v3214_v6 = vld [vmem:[%s4846_s0 + $0x90] sm:$0xf0] }
  0x38   :  { %1525 = vmatpush.bf16.msrb.mxu0 %v3344_v44  ;;  %1614 = vmatpush.bf16.msrb.mxu1 %v3352_v45  ;;  %v3204_v44 = vld [vmem:[%s4846_s0 + $0x44] sm:$0xf]  ;;  %v2480_v45 = vld [vmem:[%s4846_s0 + $0x5c] sm:$0xf0] }
  0x3a   :  { %1350 = vmatpush.bf16.msrb.mxu2 %v3325_v18  ;;  %v3200_v18 = vld [vmem:[%s4846_s0 + $0x20] sm:$0xf0] }
  0x3b   :  { %1439 = vmatpush.bf16.msrb.mxu3 %v3333_v46  ;;  %v2486_v46 = vld [vmem:[%s4846_s0 + $0x48] sm:$0xf] }
  0x3c   :  { %1526 = vmatpush.bf16.msrb.mxu0 %v3343_v47  ;;  %v3208_v47 = vld [vmem:[%s4846_s0 + $0x60] sm:$0xf0] }
  0x3e   :  { %1351 = vmatpush.bf16.msrb.mxu2 %v3324_v39 }
  0x3f   :  { %1440 = vmatpush.bf16.msrb.mxu3 %v3332_v57 }
  0x40   :  { %1527 = vmatpush.bf16.msrb.mxu0 %v3342_v58  ;;  %v2491_v58 = vor.u32 %v3205_v50, %v2488_v51 }
  0x41   :  { %1224 = vmatmul.bf16.gmra.mxu2 %v2723_v52  ;;  %1184 = vmatmul.bf16.gmra.mxu0 %v2499_v54  ;;  %v3351_v52 = vld [vmem:[%s4845_s1 + $0x158] sm:$0xff]  ;;  %v3241_v54 = vld [vmem:[%s4846_s0 + $0x168] sm:$0xf0] }
  0x42   :  { %1313 = vmatmul.bf16.gmra.mxu3 %v2727_v53  ;;  %v2610_v53 = vld [vmem:[%s4846_s0 + $0x150] sm:$0xf]  ;;  %1615 = vmatpush.bf16.msrb.mxu1 %v3351_v52 }
  0x43   :  { %1273 = vmatmul.bf16.gmra.mxu1 %v2503_v55  ;;  %v3238_v55 = vld [vmem:[%s4846_s0 + $0x154] sm:$0xf]  ;;  %v2611_v61 = vor.u32 %v3241_v54, %v2610_v53  ;;  %1707 = vmatpush.bf16.msra.mxu2 %v3356_v0  ;;  %v2479_v53 = vor.u32 %v3207_v42, %v2478_v41  ;;  %v2483_v54 = vor.u32 %v3204_v44, %v2480_v45  ;;  %v2542_v41 = vld [vmem:[%s4846_s0 + $0xb8] sm:$0xf] }
  0x44   :  { %v2615_v62 = vor.u32 %v3238_v55, %v2612_v56  ;;  %v2487_v55 = vor.u32 %v3208_v47, %v2486_v46  ;;  %v3222_v42 = vld [vmem:[%s4846_s0 + $0xd0] sm:$0xf0]  ;;  %v3219_v46 = vld [vmem:[%s4846_s0 + $0xbc] sm:$0xf]  ;;  %v2544_v47 = vld [vmem:[%s4846_s0 + $0xd4] sm:$0xf0] }
  0x45   :  { %v2543_v51 = vor.u32 %v3222_v42, %v2542_v41  ;;  %v3235_v41 = vld [vmem:[%s4846_s0 + $0x138] sm:$0xf0] }
  0x46   :  { %1616 = vmatpush.bf16.msrb.mxu1 %v3350_v63 }
  0x51   :  { %1229 = vmatmul.bf16.gmra.mxu2 %v2751_v1  ;;  %1189 = vmatmul.bf16.gmra.mxu0 %v2527_v3  ;;  %v3341_v1 = vld [vmem:[%s4845_s1 + $0x108] sm:$0xff]  ;;  %v3340_v3 = vld [vmem:[%s4845_s1 + $0x100] sm:$0xff] }
  0x52   :  { %1318 = vmatmul.bf16.gmra.mxu3 %v2755_v2  ;;  %1528 = vmatpush.bf16.msrb.mxu0 %v3341_v1  ;;  %v3349_v2 = vld [vmem:[%s4845_s1 + $0x148] sm:$0xff] }
  0x53   :  { %1278 = vmatmul.bf16.gmra.mxu1 %v2531_v4  ;;  %v3348_v4 = vld [vmem:[%s4845_s1 + $0x140] sm:$0xff] }
  0x54   :  { %1617 = vmatpush.bf16.msrb.mxu1 %v3349_v2 }
  0x56   :  { %1529 = vmatpush.bf16.msrb.mxu0 %v3340_v3 }
  0x58   :  { %1618 = vmatpush.bf16.msrb.mxu1 %v3348_v4 }
  0x61   :  { %1234 = vmatmul.bf16.gmra.mxu2 %v2779_v14  ;;  %1194 = vmatmul.bf16.gmra.mxu0 %v2555_v16  ;;  %v2867_v14 = vor.u32 %v3301_v7, %v2864_v8  ;;  %v2643_v16 = vor.u32 %v3245_v11, %v2640_v12  ;;  %v3211_v8 = vld [vmem:[%s4846_s0 + $0x7c] sm:$0xf] }
  0x62   :  { %1323 = vmatmul.bf16.gmra.mxu3 %v2783_v15  ;;  %v2639_v15 = vor.u32 %v3248_v10, %v2638_v9  ;;  %v2508_v9 = vld [vmem:[%s4846_s0 + $0x94] sm:$0xf0]  ;;  %v2514_v10 = vld [vmem:[%s4846_s0 + $0x80] sm:$0xf]  ;;  %v3215_v11 = vld [vmem:[%s4846_s0 + $0x98] sm:$0xf0] }
  0x63   :  { %1283 = vmatmul.bf16.gmra.mxu1 %v2559_v17  ;;  %v2450_v17 = vld [vmem:[%s4846_s0 + $0x8] sm:$0xf]  ;;  %v2515_v19 = vor.u32 %v3215_v11, %v2514_v10  ;;  %v2570_v10 = vld [vmem:[%s4846_s0 + $0xf0] sm:$0xf]  ;;  %v3229_v11 = vld [vmem:[%s4846_s0 + $0x108] sm:$0xf0] }
  0x64   :  { %v2451_v25 = vor.u32 %v3200_v18, %v2450_v17  ;;  %v2507_v17 = vor.u32 %v3214_v6, %v2506_v5  ;;  %v2511_v18 = vor.u32 %v3211_v8, %v2508_v9  ;;  %v3228_v5 = vld [vmem:[%s4846_s0 + $0x100] sm:$0xf0]  ;;  %v3225_v8 = vld [vmem:[%s4846_s0 + $0xec] sm:$0xf]  ;;  %v2564_v9 = vld [vmem:[%s4846_s0 + $0x104] sm:$0xf0] }
  0x71   :  { %1239 = vmatmul.bf16.gmra.mxu2 %v2807_v34  ;;  %1199 = vmatmul.bf16.gmra.mxu0 %v2583_v36 }
  0x72   :  { %1328 = vmatmul.bf16.gmra.mxu3 %v2811_v35 }
  0x73   :  { %1288 = vmatmul.bf16.gmra.mxu1 %v2587_v37 }
  0x81   :  { %1244 = vmatmul.bf16.gmra.mxu2 %v2835_v59  ;;  %1204 = vmatmul.bf16.gmra.mxu0 %v2611_v61 }
  0x82   :  { %1333 = vmatmul.bf16.gmra.mxu3 %v2839_v60 }
  0x83   :  { %1293 = vmatmul.bf16.gmra.mxu1 %v2615_v62 }
  0x91   :  { %1249 = vmatmul.bf16.gmra.mxu2 %v2863_v13  ;;  %1209 = vmatmul.bf16.gmra.mxu0 %v2639_v15  ;;  %v2516_v15 = vld [vmem:[%s4846_s0 + $0x9c] sm:$0xf0] }
  0x92   :  { %1338 = vmatmul.bf16.gmra.mxu3 %v2867_v14  ;;  %v3212_v14 = vld [vmem:[%s4846_s0 + $0x84] sm:$0xf] }
  0x93   :  { %1298 = vmatmul.bf16.gmra.mxu1 %v2643_v16  ;;  %v2519_v22 = vor.u32 %v3212_v14, %v2516_v15  ;;  %v3226_v14 = vld [vmem:[%s4846_s0 + $0xf4] sm:$0xf]  ;;  %v2572_v15 = vld [vmem:[%s4846_s0 + $0x10c] sm:$0xf0] }
  0x9e   :  { %v1175_v29 = vpop.f32.mrf.mxu0 }
  0x9f   :  { %v1176_v31 = vadd.f32 %v3817_v27, %v1175_v29 }
  0xa0   :  { %v1264_v32 = vpop.f32.mrf.mxu1 }
  0xa1   :  { %1352 = vmatmul.bf16.vlgmr.msrb.gmra.mxu2 %v2451_v25  ;;  %v3820_v33 = vadd.f32 %v1264_v32, %v1176_v31  ;;  %1530 = vmatmul.bf16.vlgmr.msrb.gmra.mxu0 %v2459_v28 }
  0xa2   :  { %1441 = vmatmul.bf16.vlgmr.msrb.gmra.mxu3 %v2455_v26 }
  0xa3   :  { %1619 = vmatmul.bf16.vlgmr.msrb.gmra.mxu1 %v2463_v30 }
  0xa4   :  { %v1215_v34 = vpop.f32.mrf.mxu2 }
  0xa5   :  { %v1304_v35 = vpop.f32.mrf.mxu3  ;;  %v1216_v36 = vadd.f32 %v3817_v27, %v1215_v34 }
  0xa6   :  { %v1177_v38 = vpop.f32.mrf.mxu0 }
  0xa7   :  { %v3823_v37 = vadd.f32 %v1304_v35, %v1216_v36  ;;  %v1178_v39 = vadd.f32 %v3817_v27, %v1177_v38  ;;  %v2534_v35 = vld [vmem:[%s4846_s0 + $0xb0] sm:$0xf]  ;;  %v3221_v36 = vld [vmem:[%s4846_s0 + $0xc8] sm:$0xf0] }
  0xa8   :  { %v1266_v40 = vpop.f32.mrf.mxu1 }
  0xa9   :  { %v3832_v43 = vadd.f32 %v1266_v40, %v1178_v39  ;;  %v3218_v39 = vld [vmem:[%s4846_s0 + $0xb4] sm:$0xf]  ;;  %v2536_v40 = vld [vmem:[%s4846_s0 + $0xcc] sm:$0xf0] }
  0xaa   :  { %v2539_v50 = vor.u32 %v3218_v39, %v2536_v40  ;;  %v2590_v40 = vld [vmem:[%s4846_s0 + $0x120] sm:$0xf] }
  0xac   :  { %v1217_v48 = vpop.f32.mrf.mxu2 }
  0xad   :  { %v1306_v49 = vpop.f32.mrf.mxu3  ;;  %v1218_v52 = vadd.f32 %v3817_v27, %v1217_v48 }
  0xae   :  { %v1180_v57 = vpop.f32.mrf.mxu0 }
  0xaf   :  { %v3853_v56 = vadd.f32 %v1306_v49, %v1218_v52  ;;  %v1181_v59 = vadd.f32 %v3817_v27, %v1180_v57  ;;  %v2535_v49 = vor.u32 %v3221_v36, %v2534_v35 }
  0xb0   :  { %v1269_v60 = vpop.f32.mrf.mxu1 }
  0xb1   :  { %1357 = vmatmul.bf16.gmra.mxu2 %v2479_v53  ;;  %v3856_v61 = vadd.f32 %v1269_v60, %v1181_v59  ;;  %1535 = vmatmul.bf16.gmra.mxu0 %v2487_v55 }
  0xb2   :  { %1446 = vmatmul.bf16.gmra.mxu3 %v2483_v54  ;;  %v2547_v54 = vor.u32 %v3219_v46, %v2544_v47  ;;  %v2598_v46 = vld [vmem:[%s4846_s0 + $0x128] sm:$0xf]  ;;  %v3236_v47 = vld [vmem:[%s4846_s0 + $0x140] sm:$0xf0] }
  0xb3   :  { %1624 = vmatmul.bf16.gmra.mxu1 %v2491_v58 }
  0xb4   :  { %v1220_v62 = vpop.f32.mrf.mxu2 }
  0xb5   :  { %v1309_v63 = vpop.f32.mrf.mxu3  ;;  %v1221_v0 = vadd.f32 %v3817_v27, %v1220_v62 }
  0xb6   :  { %v1182_v2 = vpop.f32.mrf.mxu0 }
  0xb7   :  { %v3859_v1 = vadd.f32 %v1309_v63, %v1221_v0  ;;  %v1183_v3 = vadd.f32 %v3817_v27, %v1182_v2 }
  0xb8   :  { %v1271_v4 = vpop.f32.mrf.mxu1 }
  0xb9   :  { %v3868_v7 = vadd.f32 %v1271_v4, %v1183_v3  ;;  %v2562_v4 = vld [vmem:[%s4846_s0 + $0xe8] sm:$0xf] }
  0xbc   :  { %v1222_v12 = vpop.f32.mrf.mxu2 }
  0xbd   :  { %v1311_v13 = vpop.f32.mrf.mxu3  ;;  %v1223_v16 = vadd.f32 %v3817_v27, %v1222_v12 }
  0xbe   :  { %v1185_v21 = vpop.f32.mrf.mxu0 }
  0xbf   :  { %v3889_v20 = vadd.f32 %v1311_v13, %v1223_v16  ;;  %v1186_v23 = vadd.f32 %v3817_v27, %v1185_v21 }
  0xc0   :  { %v1274_v24 = vpop.f32.mrf.mxu1 }
  0xc1   :  { %1362 = vmatmul.bf16.gmra.mxu2 %v2507_v17  ;;  %v3892_v25 = vadd.f32 %v1274_v24, %v1186_v23  ;;  %1540 = vmatmul.bf16.gmra.mxu0 %v2515_v19  ;;  %v2563_v17 = vor.u32 %v3228_v5, %v2562_v4  ;;  %v2571_v19 = vor.u32 %v3229_v11, %v2570_v10 }
  0xc2   :  { %1451 = vmatmul.bf16.gmra.mxu3 %v2511_v18  ;;  %v2567_v18 = vor.u32 %v3225_v8, %v2564_v9  ;;  %v2575_v23 = vor.u32 %v3226_v14, %v2572_v15  ;;  %v3242_v14 = vld [vmem:[%s4846_s0 + $0x170] sm:$0xf0] }
  0xc3   :  { %1629 = vmatmul.bf16.gmra.mxu1 %v2519_v22 }
  0xc4   :  { %v1225_v26 = vpop.f32.mrf.mxu2 }
  0xc5   :  { %v1314_v28 = vpop.f32.mrf.mxu3  ;;  %v1226_v29 = vadd.f32 %v3817_v27, %v1225_v26 }
  0xc6   :  { %v1187_v31 = vpop.f32.mrf.mxu0 }
  0xc7   :  { %v3895_v30 = vadd.f32 %v1314_v28, %v1226_v29  ;;  %v1188_v32 = vadd.f32 %v3817_v27, %v1187_v31 }
  0xc8   :  { %v1276_v34 = vpop.f32.mrf.mxu1 }
  0xc9   :  { %v3904_v38 = vadd.f32 %v1276_v34, %v1188_v32 }
  0xcc   :  { %v1227_v44 = vpop.f32.mrf.mxu2 }
  0xcd   :  { %v1316_v45 = vpop.f32.mrf.mxu3  ;;  %v1228_v48 = vadd.f32 %v3817_v27, %v1227_v44  ;;  %v3232_v44 = vld [vmem:[%s4846_s0 + $0x124] sm:$0xf] }
  0xce   :  { %v1190_v53 = vpop.f32.mrf.mxu0 }
  0xcf   :  { %v3925_v52 = vadd.f32 %v1316_v45, %v1228_v48  ;;  %v1191_v55 = vadd.f32 %v3817_v27, %v1190_v53  ;;  %v2592_v45 = vld [vmem:[%s4846_s0 + $0x13c] sm:$0xf0] }
  0xd0   :  { %v1279_v57 = vpop.f32.mrf.mxu1 }
  0xd1   :  { %1367 = vmatmul.bf16.gmra.mxu2 %v2535_v49  ;;  %v3928_v58 = vadd.f32 %v1279_v57, %v1191_v55  ;;  %1545 = vmatmul.bf16.gmra.mxu0 %v2543_v51  ;;  %v2600_v51 = vld [vmem:[%s4846_s0 + $0x144] sm:$0xf0]  ;;  %v2595_v55 = vor.u32 %v3232_v44, %v2592_v45  ;;  %v2599_v57 = vor.u32 %v3236_v47, %v2598_v46 }
  0xd2   :  { %1456 = vmatmul.bf16.gmra.mxu3 %v2539_v50  ;;  %v3233_v50 = vld [vmem:[%s4846_s0 + $0x12c] sm:$0xf] }
  0xd3   :  { %1634 = vmatmul.bf16.gmra.mxu1 %v2547_v54  ;;  %v2591_v54 = vor.u32 %v3235_v41, %v2590_v40 }
  0xd4   :  { %v1230_v59 = vpop.f32.mrf.mxu2 }
  0xd5   :  { %v1319_v60 = vpop.f32.mrf.mxu3  ;;  %v1231_v62 = vadd.f32 %v3817_v27, %v1230_v59 }
  0xd6   :  { %v1192_v0 = vpop.f32.mrf.mxu0 }
  0xd7   :  { %v3931_v63 = vadd.f32 %v1319_v60, %v1231_v62  ;;  %v1193_v2 = vadd.f32 %v3817_v27, %v1192_v0  ;;  %v2603_v62 = vor.u32 %v3233_v50, %v2600_v51 }
  0xd8   :  { %v1281_v3 = vpop.f32.mrf.mxu1 }
  0xd9   :  { %v3940_v6 = vadd.f32 %v1281_v3, %v1193_v2 }
  0xdc   :  { %v1232_v12 = vpop.f32.mrf.mxu2 }
  0xdd   :  { %v1321_v13 = vpop.f32.mrf.mxu3  ;;  %v1233_v16 = vadd.f32 %v3817_v27, %v1232_v12 }
  0xde   :  { %v1195_v22 = vpop.f32.mrf.mxu0 }
  0xdf   :  { %v3961_v21 = vadd.f32 %v1321_v13, %v1233_v16  ;;  %v1196_v24 = vadd.f32 %v3817_v27, %v1195_v22  ;;  %v2618_v13 = vld [vmem:[%s4846_s0 + $0x158] sm:$0xf]  ;;  %v3239_v16 = vld [vmem:[%s4846_s0 + $0x15c] sm:$0xf] }
  0xe0   :  { %v1284_v26 = vpop.f32.mrf.mxu1 }
  0xe1   :  { %1372 = vmatmul.bf16.gmra.mxu2 %v2563_v17  ;;  %v3964_v28 = vadd.f32 %v1284_v26, %v1196_v24  ;;  %1550 = vmatmul.bf16.gmra.mxu0 %v2571_v19  ;;  %v2620_v17 = vld [vmem:[%s4846_s0 + $0x174] sm:$0xf0]  ;;  %v3243_v19 = vld [vmem:[%s4846_s0 + $0x178] sm:$0xf0]  ;;  %v3240_v24 = vld [vmem:[%s4846_s0 + $0x164] sm:$0xf] }
  0xe2   :  { %1461 = vmatmul.bf16.gmra.mxu3 %v2567_v18  ;;  %v2626_v18 = vld [vmem:[%s4846_s0 + $0x160] sm:$0xf] }
  0xe3   :  { %1639 = vmatmul.bf16.gmra.mxu1 %v2575_v23  ;;  %v2628_v26 = vld [vmem:[%s4846_s0 + $0x17c] sm:$0xf0] }
  0xe4   :  { %v1235_v29 = vpop.f32.mrf.mxu2  ;;  %v2631_v40 = vor.u32 %v3240_v24, %v2628_v26  ;;  %v3364_v24 = vld [vmem:[%s4848_s3 + $0x38] sm:$0xff] }
  0xe5   :  { %v1324_v31 = vpop.f32.mrf.mxu3  ;;  %v1236_v32 = vadd.f32 %v3817_v27, %v1235_v29  ;;  %1905 = vmatpush.bf16.msra.mxu3 %v3364_v24  ;;  %v3263_v24 = vld [vmem:[%s4846_s0 + $0x218] sm:$0xf0] }
  0xe6   :  { %v1197_v35 = vpop.f32.mrf.mxu0 }
  0xe7   :  { %v3967_v34 = vadd.f32 %v1324_v31, %v1236_v32  ;;  %v1198_v36 = vadd.f32 %v3817_v27, %v1197_v35  ;;  %v2619_v31 = vor.u32 %v3242_v14, %v2618_v13  ;;  %v2623_v32 = vor.u32 %v3239_v16, %v2620_v17 }
  0xe8   :  { %v1286_v39 = vpop.f32.mrf.mxu1  ;;  %v2627_v35 = vor.u32 %v3243_v19, %v2626_v18 }
  0xe9   :  { %v3976_v42 = vadd.f32 %v1286_v39, %v1198_v36 }
  0xec   :  { %v1237_v48 = vpop.f32.mrf.mxu2 }
  0xed   :  { %v1326_v49 = vpop.f32.mrf.mxu3  ;;  %v1238_v53 = vadd.f32 %v3817_v27, %v1237_v48 }
  0xee   :  { %v1200_v60 = vpop.f32.mrf.mxu0 }
  0xef   :  { %v3997_v59 = vadd.f32 %v1326_v49, %v1238_v53  ;;  %v1201_v0 = vadd.f32 %v3817_v27, %v1200_v60  ;;  %v3246_v60 = vld [vmem:[%s4846_s0 + $0x194] sm:$0xf] }
  0xf0   :  { %v1289_v2 = vpop.f32.mrf.mxu1 }
  0xf1   :  { %1377 = vmatmul.bf16.gmra.mxu2 %v2591_v54  ;;  %v4000_v3 = vadd.f32 %v1289_v2, %v1201_v0  ;;  %1555 = vmatmul.bf16.gmra.mxu0 %v2599_v57  ;;  %v2646_v54 = vld [vmem:[%s4846_s0 + $0x190] sm:$0xf]  ;;  %v2654_v0 = vld [vmem:[%s4846_s0 + $0x198] sm:$0xf]  ;;  %v3250_v2 = vld [vmem:[%s4846_s0 + $0x1b0] sm:$0xf0] }
  0xf2   :  { %1466 = vmatmul.bf16.gmra.mxu3 %v2595_v55  ;;  %v3249_v55 = vld [vmem:[%s4846_s0 + $0x1a8] sm:$0xf0]  ;;  %v2655_v14 = vor.u32 %v3250_v2, %v2654_v0 }
  0xf3   :  { %1644 = vmatmul.bf16.gmra.mxu1 %v2603_v62  ;;  %v2648_v62 = vld [vmem:[%s4846_s0 + $0x1ac] sm:$0xf0] }
  0xf4   :  { %v1240_v4 = vpop.f32.mrf.mxu2  ;;  %v2651_v13 = vor.u32 %v3246_v60, %v2648_v62  ;;  %v2684_v60 = vld [vmem:[%s4846_s0 + $0x1ec] sm:$0xf0] }
  0xf5   :  { %v1329_v5 = vpop.f32.mrf.mxu3  ;;  %v1241_v8 = vadd.f32 %v3817_v27, %v1240_v4 }
  0xf6   :  { %v1202_v10 = vpop.f32.mrf.mxu0 }
  0xf7   :  { %v4003_v9 = vadd.f32 %v1329_v5, %v1241_v8  ;;  %v1203_v11 = vadd.f32 %v3817_v27, %v1202_v10  ;;  %v3247_v8 = vld [vmem:[%s4846_s0 + $0x19c] sm:$0xf]  ;;  %v2656_v10 = vld [vmem:[%s4846_s0 + $0x1b4] sm:$0xf0] }
  0xf8   :  { %v1291_v12 = vpop.f32.mrf.mxu1  ;;  %v2659_v18 = vor.u32 %v3247_v8, %v2656_v10 }
  0xf9   :  { %v4012_v15 = vadd.f32 %v1291_v12, %v1203_v11  ;;  %v2647_v12 = vor.u32 %v3249_v55, %v2646_v54  ;;  %v3254_v55 = vld [vmem:[%s4846_s0 + $0x1d4] sm:$0xf] }
  0xfa   :  { %v2687_v10 = vor.u32 %v3254_v55, %v2684_v60 }
  0xfc   :  { %v1242_v22 = vpop.f32.mrf.mxu2 }
  0xfd   :  { %v1331_v23 = vpop.f32.mrf.mxu3  ;;  %v1243_v29 = vadd.f32 %v3817_v27, %v1242_v22 }
  0xfe   :  { %v1205_v39 = vpop.f32.mrf.mxu0 }
  0xff   :  { %v4033_v36 = vadd.f32 %v1331_v23, %v1243_v29  ;;  %v1206_v41 = vadd.f32 %v3817_v27, %v1205_v39 }
 0x100   :  { %v1294_v44 = vpop.f32.mrf.mxu1 }
 0x101   :  { %1382 = vmatmul.bf16.gmra.mxu2 %v2619_v31  ;;  %v4036_v45 = vadd.f32 %v1294_v44, %v1206_v41  ;;  %1560 = vmatmul.bf16.gmra.mxu0 %v2627_v35  ;;  %v2674_v41 = vld [vmem:[%s4846_s0 + $0x1c8] sm:$0xf]  ;;  %v3256_v44 = vld [vmem:[%s4846_s0 + $0x1e0] sm:$0xf0] }
 0x102   :  { %1471 = vmatmul.bf16.gmra.mxu3 %v2623_v32  ;;  %v2675_v0 = vor.u32 %v3256_v44, %v2674_v41  ;;  %v3261_v41 = vld [vmem:[%s4846_s0 + $0x20c] sm:$0xf]  ;;  %v2712_v44 = vld [vmem:[%s4846_s0 + $0x224] sm:$0xf0] }
 0x103   :  { %1649 = vmatmul.bf16.gmra.mxu1 %v2631_v40  ;;  %v2715_v55 = vor.u32 %v3261_v41, %v2712_v44 }
 0x104   :  { %v1245_v46 = vpop.f32.mrf.mxu2 }
 0x105   :  { %v1334_v47 = vpop.f32.mrf.mxu3  ;;  %v1246_v48 = vadd.f32 %v3817_v27, %v1245_v46 }
 0x106   :  { %v1207_v50 = vpop.f32.mrf.mxu0 }
 0x107   :  { %v4039_v49 = vadd.f32 %v1334_v47, %v1246_v48  ;;  %v1208_v51 = vadd.f32 %v3817_v27, %v1207_v50  ;;  %v3253_v47 = vld [vmem:[%s4846_s0 + $0x1cc] sm:$0xf]  ;;  %v2676_v48 = vld [vmem:[%s4846_s0 + $0x1e4] sm:$0xf0]  ;;  %v2682_v50 = vld [vmem:[%s4846_s0 + $0x1d0] sm:$0xf] }
 0x108   :  { %v1296_v53 = vpop.f32.mrf.mxu1  ;;  %v2679_v2 = vor.u32 %v3253_v47, %v2676_v48 }
 0x109   :  { %v4048_v57 = vadd.f32 %v1296_v53, %v1208_v51  ;;  %v3257_v51 = vld [vmem:[%s4846_s0 + $0x1e8] sm:$0xf0] }
 0x10c   :  { %v1247_v4 = vpop.f32.mrf.mxu2 }
 0x10d   :  { %v1336_v5 = vpop.f32.mrf.mxu3  ;;  %v1248_v11 = vadd.f32 %v3817_v27, %v1247_v4  ;;  %v2683_v4 = vor.u32 %v3257_v51, %v2682_v50 }
 0x10e   :  { %v1210_v17 = vpop.f32.mrf.mxu0 }
 0x10f   :  { %v4069_v16 = vadd.f32 %v1336_v5, %v1248_v11  ;;  %v1211_v19 = vadd.f32 %v3817_v27, %v1210_v17 }
 0x110   :  { %v1299_v22 = vpop.f32.mrf.mxu1 }
 0x111   :  { %1387 = vmatmul.bf16.gmra.mxu2 %v2647_v12  ;;  %v4072_v23 = vadd.f32 %v1299_v22, %v1211_v19  ;;  %1565 = vmatmul.bf16.gmra.mxu0 %v2655_v14  ;;  %v2702_v22 = vld [vmem:[%s4846_s0 + $0x200] sm:$0xf] }
 0x112   :  { %1476 = vmatmul.bf16.gmra.mxu3 %v2651_v13  ;;  %v2703_v48 = vor.u32 %v3263_v24, %v2702_v22  ;;  %v3271_v22 = vld [vmem:[%s4846_s0 + $0x258] sm:$0xf0] }
 0x113   :  { %1654 = vmatmul.bf16.gmra.mxu1 %v2659_v18 }
 0x114   :  { %v1250_v26 = vpop.f32.mrf.mxu2 }
 0x115   :  { %v1339_v29 = vpop.f32.mrf.mxu3  ;;  %v1251_v31 = vadd.f32 %v3817_v27, %v1250_v26  ;;  %v3260_v26 = vld [vmem:[%s4846_s0 + $0x204] sm:$0xf] }
 0x116   :  { %v1212_v35 = vpop.f32.mrf.mxu0 }
 0x117   :  { %v4078_v32 = vadd.f32 %v1339_v29, %v1251_v31  ;;  %v1213_v39 = vadd.f32 %v3817_v27, %v1212_v35  ;;  %v2710_v31 = vld [vmem:[%s4846_s0 + $0x208] sm:$0xf]  ;;  %v3264_v35 = vld [vmem:[%s4846_s0 + $0x220] sm:$0xf0] }
 0x118   :  { %v1301_v40 = vpop.f32.mrf.mxu1  ;;  %v2711_v51 = vor.u32 %v3264_v35, %v2710_v31  ;;  %v2740_v31 = vld [vmem:[%s4846_s0 + $0x25c] sm:$0xf0] }
 0x119   :  { %v4087_v46 = vadd.f32 %v1301_v40, %v1213_v39 }
 0x11c   :  { %v1252_v53 = vpop.f32.mrf.mxu2 }
 0x11d   :  { %v1341_v54 = vpop.f32.mrf.mxu3  ;;  %v1253_v62 = vadd.f32 %v3817_v27, %v1252_v53 }
 0x11e   :  { %v1531_v8 = vpop.f32.mrf.mxu0 }
 0x11f   :  { %v4108_v5 = vadd.f32 %v1341_v54, %v1253_v62 }
 0x120   :  { %v1620_v11 = vpop.f32.mrf.mxu1 }
 0x121   :  { %1392 = vmatmul.bf16.gmra.mxu2 %v2675_v0  ;;  %1570 = vmatmul.bf16.gmra.mxu0 %v2683_v4 }
 0x122   :  { %1481 = vmatmul.bf16.gmra.mxu3 %v2679_v2  ;;  %v3363_v2 = vld [vmem:[%s4848_s3 + $0x30] sm:$0xff] }
 0x123   :  { %1659 = vmatmul.bf16.gmra.mxu1 %v2687_v10  ;;  %1906 = vmatpush.bf16.msra.mxu3 %v3363_v2 }
 0x124   :  { %v1353_v12 = vpop.f32.mrf.mxu2 }
 0x125   :  { %v1442_v13 = vpop.f32.mrf.mxu3  ;;  %v1354_v14 = vadd.f32 %v1353_v12, %v3820_v33  ;;  %v2704_v33 = vld [vmem:[%s4846_s0 + $0x21c] sm:$0xf0] }
 0x126   :  { %v1533_v18 = vpop.f32.mrf.mxu0  ;;  %v2707_v50 = vor.u32 %v3260_v26, %v2704_v33  ;;  %v3268_v33 = vld [vmem:[%s4846_s0 + $0x244] sm:$0xf] }
 0x127   :  { %v1443_v17 = vadd.f32 %v1442_v13, %v1354_v14  ;;  %v2730_v14 = vld [vmem:[%s4846_s0 + $0x238] sm:$0xf] }
 0x128   :  { %v1622_v19 = vpop.f32.mrf.mxu1 }
 0x129   :  { %v1532_v27 = vadd.f32 %v1531_v8, %v1443_v17  ;;  %v3270_v17 = vld [vmem:[%s4846_s0 + $0x250] sm:$0xf0] }
 0x12b   :  { %v4123_v29 = vadd.f32 %v1620_v11, %v1532_v27  ;;  %v2738_v27 = vld [vmem:[%s4846_s0 + $0x240] sm:$0xf] }
 0x12c   :  { %v1355_v39 = vpop.f32.mrf.mxu2  ;;  %v2739_v41 = vor.u32 %v3271_v22, %v2738_v27 }
 0x12d   :  { %v1444_v40 = vpop.f32.mrf.mxu3  ;;  %v1356_v47 = vadd.f32 %v1355_v39, %v3832_v43  ;;  %v2731_v39 = vor.u32 %v3270_v17, %v2730_v14 }
 0x12e   :  { %v1536_v54 = vpop.f32.mrf.mxu0 }
 0x12f   :  { %v1445_v53 = vadd.f32 %v1444_v40, %v1356_v47 }
 0x130   :  { %v1625_v60 = vpop.f32.mrf.mxu1 }
 0x131   :  { %v1534_v62 = vadd.f32 %v1533_v18, %v1445_v53  ;;  %1397 = vmatmul.bf16.gmra.mxu2 %v2703_v48  ;;  %1575 = vmatmul.bf16.gmra.mxu0 %v2711_v51  ;;  %v3267_v18 = vld [vmem:[%s4846_s0 + $0x23c] sm:$0xf]  ;;  %v2743_v48 = vor.u32 %v3268_v33, %v2740_v31 }
 0x132   :  { %1486 = vmatmul.bf16.gmra.mxu3 %v2707_v50 }
 0x133   :  { %v4138_v0 = vadd.f32 %v1622_v19, %v1534_v62  ;;  %1664 = vmatmul.bf16.gmra.mxu1 %v2715_v55 }
 0x134   :  { %v1358_v4 = vpop.f32.mrf.mxu2 }
 0x135   :  { %v1447_v43 = vpop.f32.mrf.mxu3  ;;  %v1359_v8 = vadd.f32 %v1358_v4, %v3856_v61  ;;  %v2732_v61 = vld [vmem:[%s4846_s0 + $0x254] sm:$0xf0]  ;;  %v2758_v4 = vld [vmem:[%s4846_s0 + $0x270] sm:$0xf] }
 0x136   :  { %v1538_v11 = vpop.f32.mrf.mxu0  ;;  %v2735_v40 = vor.u32 %v3267_v18, %v2732_v61  ;;  %v3275_v18 = vld [vmem:[%s4846_s0 + $0x27c] sm:$0xf]  ;;  %v2768_v61 = vld [vmem:[%s4846_s0 + $0x294] sm:$0xf0] }
 0x137   :  { %v1448_v10 = vadd.f32 %v1447_v43, %v1359_v8  ;;  %v3277_v43 = vld [vmem:[%s4846_s0 + $0x288] sm:$0xf0]  ;;  %v3274_v8 = vld [vmem:[%s4846_s0 + $0x274] sm:$0xf]  ;;  %v2771_v31 = vor.u32 %v3275_v18, %v2768_v61 }
 0x138   :  { %v1627_v12 = vpop.f32.mrf.mxu1  ;;  %v2759_v22 = vor.u32 %v3277_v43, %v2758_v4 }
 0x139   :  { %v1537_v13 = vadd.f32 %v1536_v54, %v1448_v10  ;;  %v2760_v10 = vld [vmem:[%s4846_s0 + $0x28c] sm:$0xf0] }
 0x13b   :  { %v4156_v19 = vadd.f32 %v1625_v60, %v1537_v13  ;;  %v3278_v13 = vld [vmem:[%s4846_s0 + $0x290] sm:$0xf0] }
 0x13c   :  { %v1360_v24 = vpop.f32.mrf.mxu2 }
 0x13d   :  { %v1449_v26 = vpop.f32.mrf.mxu3  ;;  %v1361_v35 = vadd.f32 %v1360_v24, %v3868_v7  ;;  %v2763_v24 = vor.u32 %v3274_v8, %v2760_v10  ;;  %v3282_v8 = vld [vmem:[%s4846_s0 + $0x2b4] sm:$0xf]  ;;  %v2796_v10 = vld [vmem:[%s4846_s0 + $0x2cc] sm:$0xf0] }
 0x13e   :  { %v1541_v47 = vpop.f32.mrf.mxu0  ;;  %v2799_v61 = vor.u32 %v3282_v8, %v2796_v10 }
 0x13f   :  { %v1450_v44 = vadd.f32 %v1449_v26, %v1361_v35 }
 0x140   :  { %v1630_v51 = vpop.f32.mrf.mxu1 }
 0x141   :  { %v1539_v50 = vadd.f32 %v1538_v11, %v1450_v44  ;;  %1402 = vmatmul.bf16.gmra.mxu2 %v2731_v39  ;;  %1580 = vmatmul.bf16.gmra.mxu0 %v2739_v41  ;;  %v3362_v41 = vld [vmem:[%s4848_s3 + $0x28] sm:$0xff] }
 0x142   :  { %1491 = vmatmul.bf16.gmra.mxu3 %v2735_v40 }
 0x143   :  { %v4171_v53 = vadd.f32 %v1627_v12, %v1539_v50  ;;  %1669 = vmatmul.bf16.gmra.mxu1 %v2743_v48  ;;  %v2766_v12 = vld [vmem:[%s4846_s0 + $0x278] sm:$0xf]  ;;  %1907 = vmatpush.bf16.msra.mxu3 %v3362_v41  ;;  %v3288_v41 = vld [vmem:[%s4846_s0 + $0x2e4] sm:$0xf] }
 0x144   :  { %v1363_v54 = vpop.f32.mrf.mxu2  ;;  %v2767_v26 = vor.u32 %v3278_v13, %v2766_v12 }
 0x145   :  { %v1452_v55 = vpop.f32.mrf.mxu3  ;;  %v1364_v60 = vadd.f32 %v1363_v54, %v3892_v25  ;;  %v2786_v54 = vld [vmem:[%s4846_s0 + $0x2a8] sm:$0xf] }
 0x146   :  { %v1543_v2 = vpop.f32.mrf.mxu0 }
 0x147   :  { %v1453_v62 = vadd.f32 %v1452_v55, %v1364_v60  ;;  %v3284_v55 = vld [vmem:[%s4846_s0 + $0x2c0] sm:$0xf0]  ;;  %v3281_v60 = vld [vmem:[%s4846_s0 + $0x2ac] sm:$0xf] }
 0x148   :  { %v1632_v11 = vpop.f32.mrf.mxu1  ;;  %v2787_v12 = vor.u32 %v3284_v55, %v2786_v54 }
 0x149   :  { %v1542_v7 = vadd.f32 %v1541_v47, %v1453_v62 }
 0x14b   :  { %v4186_v25 = vadd.f32 %v1630_v51, %v1542_v7  ;;  %v2794_v7 = vld [vmem:[%s4846_s0 + $0x2b0] sm:$0xf] }
 0x14c   :  { %v1365_v14 = vpop.f32.mrf.mxu2 }
 0x14d   :  { %v1454_v17 = vpop.f32.mrf.mxu3  ;;  %v1366_v27 = vadd.f32 %v1365_v14, %v3904_v38 }
 0x14e   :  { %v1546_v40 = vpop.f32.mrf.mxu0 }
 0x14f   :  { %v1455_v33 = vadd.f32 %v1454_v17, %v1366_v27 }
 0x150   :  { %v1635_v48 = vpop.f32.mrf.mxu1 }
 0x151   :  { %v1544_v35 = vadd.f32 %v1543_v2, %v1455_v33  ;;  %1407 = vmatmul.bf16.gmra.mxu2 %v2759_v22  ;;  %1585 = vmatmul.bf16.gmra.mxu0 %v2767_v26  ;;  %v3285_v2 = vld [vmem:[%s4846_s0 + $0x2c8] sm:$0xf0] }
 0x152   :  { %1496 = vmatmul.bf16.gmra.mxu3 %v2763_v24  ;;  %v2795_v17 = vor.u32 %v3285_v2, %v2794_v7  ;;  %v3361_v2 = vld [vmem:[%s4848_s3 + $0x20] sm:$0xff] }
 0x153   :  { %v4201_v39 = vadd.f32 %v1632_v11, %v1544_v35  ;;  %1674 = vmatmul.bf16.gmra.mxu1 %v2771_v31  ;;  %1908 = vmatpush.bf16.msra.mxu3 %v3361_v2 }
 0x154   :  { %v1368_v44 = vpop.f32.mrf.mxu2 }
 0x155   :  { %v1457_v47 = vpop.f32.mrf.mxu3  ;;  %v1369_v38 = vadd.f32 %v1368_v44, %v3928_v58  ;;  %v2788_v58 = vld [vmem:[%s4846_s0 + $0x2c4] sm:$0xf0]  ;;  %v2816_v44 = vld [vmem:[%s4846_s0 + $0x2fc] sm:$0xf0] }
 0x156   :  { %v2791_v13 = vor.u32 %v3281_v60, %v2788_v58  ;;  %v1548_v14 = vpop.f32.mrf.mxu0  ;;  %v2819_v60 = vor.u32 %v3288_v41, %v2816_v44 }
 0x157   :  { %v1458_v50 = vadd.f32 %v1457_v47, %v1369_v38  ;;  %v3292_v47 = vld [vmem:[%s4846_s0 + $0x300] sm:$0xf0] }
 0x158   :  { %v1637_v27 = vpop.f32.mrf.mxu1 }
 0x159   :  { %v1547_v51 = vadd.f32 %v1546_v40, %v1458_v50  ;;  %v3291_v40 = vld [vmem:[%s4846_s0 + $0x2f8] sm:$0xf0]  ;;  %v3289_v50 = vld [vmem:[%s4846_s0 + $0x2ec] sm:$0xf] }
 0x15b   :  { %v4219_v62 = vadd.f32 %v1635_v48, %v1547_v51  ;;  %v2824_v51 = vld [vmem:[%s4846_s0 + $0x304] sm:$0xf0] }
 0x15c   :  { %v1370_v4 = vpop.f32.mrf.mxu2  ;;  %v2827_v7 = vor.u32 %v3289_v50, %v2824_v51  ;;  %v2872_v50 = vld [vmem:[%s4846_s0 + $0x36c] sm:$0xf0]  ;;  %v3306_v51 = vld [vmem:[%s4846_s0 + $0x370] sm:$0xf0] }
 0x15d   :  { %v1459_v43 = vpop.f32.mrf.mxu3  ;;  %v1371_v11 = vadd.f32 %v1370_v4, %v3940_v6  ;;  %v2814_v6 = vld [vmem:[%s4846_s0 + $0x2e0] sm:$0xf] }
 0x15e   :  { %v2815_v55 = vor.u32 %v3291_v40, %v2814_v6 }
 0x15f   :  { %v1460_v18 = vadd.f32 %v1459_v43, %v1371_v11  ;;  %v3298_v11 = vld [vmem:[%s4846_s0 + $0x330] sm:$0xf0] }
 0x161   :  { %v1549_v22 = vadd.f32 %v1548_v14, %v1460_v18  ;;  %1412 = vmatmul.bf16.gmra.mxu2 %v2787_v12  ;;  %1590 = vmatmul.bf16.gmra.mxu0 %v2795_v17  ;;  %v3295_v12 = vld [vmem:[%s4846_s0 + $0x31c] sm:$0xf] }
 0x162   :  { %1501 = vmatmul.bf16.gmra.mxu3 %v2791_v13  ;;  %v2844_v13 = vld [vmem:[%s4846_s0 + $0x334] sm:$0xf0]  ;;  %v3299_v14 = vld [vmem:[%s4846_s0 + $0x338] sm:$0xf0] }
 0x163   :  { %v4234_v24 = vadd.f32 %v1637_v27, %v1549_v22  ;;  %1679 = vmatmul.bf16.gmra.mxu1 %v2799_v61  ;;  %v3296_v61 = vld [vmem:[%s4846_s0 + $0x324] sm:$0xf]  ;;  %v2852_v27 = vld [vmem:[%s4846_s0 + $0x33c] sm:$0xf0] }
 0x164   :  { %v1373_v26 = vpop.f32.mrf.mxu2  ;;  %v2855_v6 = vor.u32 %v3296_v61, %v2852_v27 }
 0x165   :  { %v1462_v33 = vpop.f32.mrf.mxu3  ;;  %v1374_v31 = vadd.f32 %v1373_v26, %v3964_v28  ;;  %v2822_v28 = vld [vmem:[%s4846_s0 + $0x2e8] sm:$0xf] }
 0x166   :  { %v2823_v58 = vor.u32 %v3292_v47, %v2822_v28  ;;  %v2870_v47 = vld [vmem:[%s4846_s0 + $0x350] sm:$0xf] }
 0x167   :  { %v4237_v35 = vadd.f32 %v1462_v33, %v1374_v31  ;;  %v2847_v33 = vor.u32 %v3295_v12, %v2844_v13 }
 0x16c   :  { %v1375_v38 = vpop.f32.mrf.mxu2 }
 0x16d   :  { %v4257_v48 = vpop.f32.mrf.mxu3  ;;  %v4266_v54 = vadd.f32 %v1375_v38, %v3976_v42  ;;  %v2842_v42 = vld [vmem:[%s4846_s0 + $0x318] sm:$0xf]  ;;  %v3302_v38 = vld [vmem:[%s4846_s0 + $0x354] sm:$0xf] }
 0x16e   :  { %v2843_v26 = vor.u32 %v3298_v11, %v2842_v42  ;;  %v3360_v11 = vld [vmem:[%s4848_s3 + $0x18] sm:$0xff] }
 0x16f   :  { %1909 = vmatpush.bf16.msra.mxu3 %v3360_v11 }
 0x171   :  { %1417 = vmatmul.bf16.gmra.mxu2 %v2815_v55  ;;  %1595 = vmatmul.bf16.gmra.mxu0 %v2823_v58  ;;  %v3303_v58 = vld [vmem:[%s4846_s0 + $0x35c] sm:$0xf] }
 0x172   :  { %1506 = vmatmul.bf16.gmra.mxu3 %v2819_v60 }
 0x173   :  { %1684 = vmatmul.bf16.gmra.mxu1 %v2827_v7  ;;  %v2880_v7 = vld [vmem:[%s4846_s0 + $0x374] sm:$0xf0] }
 0x174   :  { %v1378_v4 = vpop.f32.mrf.mxu2  ;;  %v2883_v42 = vor.u32 %v3303_v58, %v2880_v7  ;;  %v2522_v7 = vld [vmem:[%s4846_s0 + $0x88] sm:$0xf] }
 0x175   :  { %v1467_v43 = vpop.f32.mrf.mxu3  ;;  %v1379_v8 = vadd.f32 %v1378_v4, %v4000_v3  ;;  %v2850_v3 = vld [vmem:[%s4846_s0 + $0x320] sm:$0xf] }
 0x176   :  { %v2851_v31 = vor.u32 %v3299_v14, %v2850_v3 }
 0x177   :  { %v4272_v10 = vadd.f32 %v1467_v43, %v1379_v8  ;;  %v2875_v43 = vor.u32 %v3302_v38, %v2872_v50  ;;  %v3359_v50 = vld [vmem:[%s4848_s3 + $0x10] sm:$0xff] }
 0x178   :  { %1910 = vmatpush.bf16.msra.mxu3 %v3359_v50 }
 0x17c   :  { %v1380_v17 = vpop.f32.mrf.mxu2 }
 0x17d   :  { %v4292_v18 = vpop.f32.mrf.mxu3  ;;  %v4301_v22 = vadd.f32 %v1380_v17, %v4012_v15  ;;  %v3305_v15 = vld [vmem:[%s4846_s0 + $0x368] sm:$0xf0]  ;;  %v3202_v17 = vld [vmem:[%s4846_s0 + $0x30] sm:$0xf0] }
 0x17e   :  { %v2871_v4 = vor.u32 %v3305_v15, %v2870_v47 }
 0x181   :  { %1422 = vmatmul.bf16.gmra.mxu2 %v2843_v26  ;;  %1600 = vmatmul.bf16.gmra.mxu0 %v2851_v31 }
 0x182   :  { %1511 = vmatmul.bf16.gmra.mxu3 %v2847_v33 }
 0x183   :  { %1689 = vmatmul.bf16.gmra.mxu1 %v2855_v6 }
 0x184   :  { %v1383_v40 = vpop.f32.mrf.mxu2 }
 0x185   :  { %v1472_v41 = vpop.f32.mrf.mxu3  ;;  %v1384_v44 = vadd.f32 %v1383_v40, %v4036_v45  ;;  %v2878_v45 = vld [vmem:[%s4846_s0 + $0x358] sm:$0xf] }
 0x186   :  { %v2879_v8 = vor.u32 %v3306_v51, %v2878_v45  ;;  %v3372_v40 = vld [vmem:[%s4849_s5 + $0x38] sm:$0xff] }
 0x187   :  { %v4304_v28 = vadd.f32 %v1472_v41, %v1384_v44  ;;  %2110 = vmatpush.bf16.msra.mxu0 %v3372_v40  ;;  %v3209_v44 = vld [vmem:[%s4846_s0 + $0x68] sm:$0xf0] }
 0x18c   :  { %v1385_v55 = vpop.f32.mrf.mxu2 }
 0x18d   :  { %v4324_v60 = vpop.f32.mrf.mxu3  ;;  %v4333_v2 = vadd.f32 %v1385_v55, %v4048_v57  ;;  %v2466_v57 = vld [vmem:[%s4846_s0 + $0x18] sm:$0xf] }
 0x18e   :  { %v2467_v33 = vor.u32 %v3202_v17, %v2466_v57  ;;  %v2550_v57 = vld [vmem:[%s4846_s0 + $0xc0] sm:$0xf] }
 0x191   :  { %1427 = vmatmul.bf16.gmra.mxu2 %v2871_v4  ;;  %1605 = vmatmul.bf16.gmra.mxu0 %v2879_v8 }
 0x192   :  { %1516 = vmatmul.bf16.gmra.mxu3 %v2875_v43 }
 0x193   :  { %1694 = vmatmul.bf16.gmra.mxu1 %v2883_v42 }
 0x194   :  { %v1388_v12 = vpop.f32.mrf.mxu2 }
 0x195   :  { %v1477_v13 = vpop.f32.mrf.mxu3  ;;  %v1389_v3 = vadd.f32 %v1388_v12, %v4072_v23 }
 0x197   :  { %v4339_v14 = vadd.f32 %v1477_v13, %v1389_v3  ;;  %v3371_v13 = vld [vmem:[%s4849_s5 + $0x30] sm:$0xff] }
 0x198   :  { %2111 = vmatpush.bf16.msra.mxu0 %v3371_v13 }
 0x19c   :  { %v1390_v61 = vpop.f32.mrf.mxu2 }
 0x19d   :  { %v4347_v27 = vpop.f32.mrf.mxu3  ;;  %v4350_v26 = vadd.f32 %v1390_v61, %v4087_v46  ;;  %v2494_v46 = vld [vmem:[%s4846_s0 + $0x50] sm:$0xf] }
 0x19e   :  { %v2495_v38 = vor.u32 %v3209_v44, %v2494_v46  ;;  %v2578_v44 = vld [vmem:[%s4846_s0 + $0xf8] sm:$0xf] }
 0x1a1   :  { %3084 = vmatmul.msk.bf16.vlgmr.msra.gmra.mxu2 %vm1117_vm0, %v2467_v33 }
 0x1a4   :  { %v1393_v23 = vpop.f32.mrf.mxu2 }
 0x1a5   :  { %v1482_v31 = vpop.f32.mrf.mxu3  ;;  %v1394_v6 = vadd.f32 %v1393_v23, %v3823_v37  ;;  %v3358_v23 = vld [vmem:[%s4848_s3 + $0x8] sm:$0xff] }
 0x1a6   :  { %1911 = vmatpush.bf16.msra.mxu3 %v3358_v23 }
 0x1a7   :  { %v4357_v41 = vadd.f32 %v1482_v31, %v1394_v6 }
 0x1ac   :  { %v1395_v47 = vpop.f32.mrf.mxu2 }
 0x1ad   :  { %v4365_v15 = vpop.f32.mrf.mxu3  ;;  %v4368_v37 = vadd.f32 %v1395_v47, %v3853_v56  ;;  %v3216_v56 = vld [vmem:[%s4846_s0 + $0xa0] sm:$0xf0] }
 0x1ae   :  { %v2523_v42 = vor.u32 %v3216_v56, %v2522_v7  ;;  %v3370_v7 = vld [vmem:[%s4849_s5 + $0x28] sm:$0xff] }
 0x1af   :  { %2112 = vmatpush.bf16.msra.mxu0 %v3370_v7 }
 0x1b1   :  { %3085 = vmatmul.msk.bf16.gmra.mxu2 %vm1117_vm0, %v2495_v38 }
 0x1b4   :  { %v1398_v45 = vpop.f32.mrf.mxu2 }
 0x1b5   :  { %v1487_v51 = vpop.f32.mrf.mxu3  ;;  %v1399_v55 = vadd.f32 %v1398_v45, %v3859_v1 }
 0x1b7   :  { %v4375_v58 = vadd.f32 %v1487_v51, %v1399_v55 }
 0x1bc   :  { %v1400_v4 = vpop.f32.mrf.mxu2 }
 0x1bd   :  { %v4383_v43 = vpop.f32.mrf.mxu3  ;;  %v4386_v8 = vadd.f32 %v1400_v4, %v3889_v20  ;;  %v3223_v20 = vld [vmem:[%s4846_s0 + $0xd8] sm:$0xf0]  ;;  %v2606_v4 = vld [vmem:[%s4846_s0 + $0x130] sm:$0xf] }
 0x1be   :  { %v2551_v33 = vor.u32 %v3223_v20, %v2550_v57 }
 0x1c1   :  { %3086 = vmatmul.msk.bf16.gmra.mxu2 %vm1117_vm0, %v2523_v42 }
 0x1c4   :  { %v1403_v1 = vpop.f32.mrf.mxu2 }
 0x1c5   :  { %v1492_v11 = vpop.f32.mrf.mxu3  ;;  %v1404_v12 = vadd.f32 %v1403_v1, %v3895_v30 }
 0x1c7   :  { %v4393_v3 = vadd.f32 %v1492_v11, %v1404_v12  ;;  %v3357_v12 = vld [vmem:[%s4848_s3] sm:$0xff] }
 0x1c8   :  { %1912 = vmatpush.bf16.msra.mxu3 %v3357_v12  ;;  %v2690_v12 = vld [vmem:[%s4846_s0 + $0x1d8] sm:$0xf] }
 0x1cc   :  { %v1405_v17 = vpop.f32.mrf.mxu2 }
 0x1cd   :  { %v4401_v61 = vpop.f32.mrf.mxu3  ;;  %v4404_v30 = vadd.f32 %v1405_v17, %v3925_v52  ;;  %v3230_v52 = vld [vmem:[%s4846_s0 + $0x110] sm:$0xf0] }
 0x1ce   :  { %v2579_v45 = vor.u32 %v3230_v52, %v2578_v44 }
 0x1d1   :  { %3087 = vmatmul.msk.bf16.gmra.mxu2 %vm1117_vm0, %v2551_v33  ;;  %v2634_v33 = vld [vmem:[%s4846_s0 + $0x168] sm:$0xf] }
 0x1d4   :  { %v1408_v31 = vpop.f32.mrf.mxu2 }
 0x1d5   :  { %v1497_v6 = vpop.f32.mrf.mxu3  ;;  %v1409_v40 = vadd.f32 %v1408_v31, %v3931_v63 }
 0x1d7   :  { %v4411_v46 = vadd.f32 %v1497_v6, %v1409_v40 }
 0x1dc   :  { %v1410_v47 = vpop.f32.mrf.mxu2 }
 0x1dd   :  { %v4419_v38 = vpop.f32.mrf.mxu3  ;;  %v4422_v50 = vadd.f32 %v1410_v47, %v3961_v21  ;;  %v3237_v21 = vld [vmem:[%s4846_s0 + $0x148] sm:$0xf0] }
 0x1de   :  { %v2607_v11 = vor.u32 %v3237_v21, %v2606_v4 }
 0x1e1   :  { %3088 = vmatmul.msk.bf16.gmra.mxu2 %vm1117_vm0, %v2579_v45  ;;  %v3369_v45 = vld [vmem:[%s4849_s5 + $0x20] sm:$0xff] }
 0x1e2   :  { %2113 = vmatpush.bf16.msra.mxu0 %v3369_v45 }
 0x1e4   :  { %v1413_v63 = vpop.f32.mrf.mxu2 }
 0x1e5   :  { %v1502_v51 = vpop.f32.mrf.mxu3  ;;  %v1414_v55 = vadd.f32 %v1413_v63, %v3967_v34  ;;  %v2662_v63 = vld [vmem:[%s4846_s0 + $0x1a0] sm:$0xf] }
 0x1e7   :  { %v4429_v56 = vadd.f32 %v1502_v51, %v1414_v55 }
 0x1ec   :  { %v1415_v42 = vpop.f32.mrf.mxu2 }
 0x1ed   :  { %v4437_v1 = vpop.f32.mrf.mxu3  ;;  %v4440_v34 = vadd.f32 %v1415_v42, %v3997_v59  ;;  %v3244_v59 = vld [vmem:[%s4846_s0 + $0x180] sm:$0xf0] }
 0x1ee   :  { %v2635_v40 = vor.u32 %v3244_v59, %v2634_v33  ;;  %v2718_v59 = vld [vmem:[%s4846_s0 + $0x210] sm:$0xf] }
 0x1f1   :  { %3089 = vmatmul.msk.bf16.gmra.mxu2 %vm1117_vm0, %v2607_v11 }
 0x1f4   :  { %v1418_v13 = vpop.f32.mrf.mxu2 }
 0x1f5   :  { %v1507_v57 = vpop.f32.mrf.mxu3  ;;  %v1419_v20 = vadd.f32 %v1418_v13, %v4003_v9  ;;  %v3258_v13 = vld [vmem:[%s4846_s0 + $0x1f0] sm:$0xf0] }
 0x1f7   :  { %v4447_v17 = vadd.f32 %v1507_v57, %v1419_v20  ;;  %v2691_v20 = vor.u32 %v3258_v13, %v2690_v12 }
 0x1fc   :  { %v1420_v23 = vpop.f32.mrf.mxu2 }
 0x1fd   :  { %v4455_v31 = vpop.f32.mrf.mxu3  ;;  %v4458_v6 = vadd.f32 %v1420_v23, %v4033_v36  ;;  %v3251_v36 = vld [vmem:[%s4846_s0 + $0x1b8] sm:$0xf0]  ;;  %v3265_v23 = vld [vmem:[%s4846_s0 + $0x228] sm:$0xf0] }
 0x1fe   :  { %v2663_v7 = vor.u32 %v3251_v36, %v2662_v63 }
 0x201   :  { %3090 = vmatmul.msk.bf16.gmra.mxu2 %vm1117_vm0, %v2635_v40 }
 0x204   :  { %v1423_v9 = vpop.f32.mrf.mxu2 }
 0x205   :  { %v1512_v44 = vpop.f32.mrf.mxu3  ;;  %v1424_v52 = vadd.f32 %v1423_v9, %v4039_v49 }
 0x207   :  { %v4462_v47 = vadd.f32 %v1512_v44, %v1424_v52  ;;  %v2719_v44 = vor.u32 %v3265_v23, %v2718_v59  ;;  %v4503_v52 = vpop.f32.mrf.mxu0 }
 0x20c   :  { %v1425_v51 = vpop.f32.mrf.mxu2 }
 0x20d   :  { %v4473_v55 = vpop.f32.mrf.mxu3  ;;  %v4476_v49 = vadd.f32 %v1425_v51, %v4069_v16  ;;  %v3380_v51 = vld [vmem:[%s4850_s7 + $0x38] sm:$0xff] }
 0x20e   :  { %2315 = vmatpush.bf16.msra.mxu1 %v3380_v51 }
 0x211   :  { %3091 = vmatmul.msk.bf16.gmra.mxu2 %vm1117_vm0, %v2663_v7  ;;  %v1640_v7 = vpop.f32.mrf.mxu1 }
 0x214   :  { %v1428_v4 = vpop.f32.mrf.mxu2 }
 0x215   :  { %v1517_v21 = vpop.f32.mrf.mxu3  ;;  %v1429_v42 = vadd.f32 %v1428_v4, %v4078_v32  ;;  %v3368_v32 = vld [vmem:[%s4849_s5 + $0x18] sm:$0xff] }
 0x216   :  { %2114 = vmatpush.bf16.msra.mxu0 %v3368_v32 }
 0x217   :  { %v4480_v11 = vadd.f32 %v1517_v21, %v1429_v42  ;;  %v3272_v21 = vld [vmem:[%s4846_s0 + $0x260] sm:$0xf0] }
 0x219   :  { %v1642_v12 = vpop.f32.mrf.mxu1 }
 0x21c   :  { %v1430_v57 = vpop.f32.mrf.mxu2 }
 0x21d   :  { %v4489_v16 = vadd.f32 %v1430_v57, %v4108_v5 }
 0x221   :  { %3092 = vmatmul.msk.bf16.gmra.mxu2 %vm1117_vm0, %v2691_v20 }
 0x224   :  { %v1709_v33 = vpop.f32.mrf.mxu2 }
 0x225   :  { %v1710_v5 = vadd.f32 %v1709_v33, %v4123_v29  ;;  %v1553_v29 = vpop.f32.mrf.mxu0 }
 0x227   :  { %v1789_v45 = vmax.f32 %v1710_v5, 0.0 }
 0x22c   :  { %v1711_v40 = vpop.f32.mrf.mxu2 }
 0x22d   :  { %v1712_v9 = vadd.f32 %v1711_v40, %v4138_v0  ;;  %v2746_v0 = vld [vmem:[%s4846_s0 + $0x248] sm:$0xf]  ;;  %v4518_v23 = vpop.f32.mrf.mxu0  ;;  %v4520_v40 = vpop.f32.mrf.mxu1 }
 0x22e   :  { %v2747_v20 = vor.u32 %v3272_v21, %v2746_v0 }
 0x22f   :  { %v1790_v63 = vmax.f32 %v1712_v9, 0.0  ;;  %v3279_v9 = vld [vmem:[%s4846_s0 + $0x298] sm:$0xf0] }
 0x231   :  { %v1821_v36 = vpack.c.bf16 %v1790_v63, %v1789_v45  ;;  %3093 = vmatmul.msk.bf16.gmra.mxu2 %vm1117_vm0, %v2719_v44 }
 0x233   :  { %1913 = vmatmul.bf16.vlgmr.msra.gmra.mxu3 %v1821_v36 }
 0x234   :  { %v1714_v4 = vpop.f32.mrf.mxu2 }
 0x235   :  { %v1715_v42 = vadd.f32 %v1714_v4, %v4156_v19  ;;  %v3367_v19 = vld [vmem:[%s4849_s5 + $0x10] sm:$0xff]  ;;  %v1558_v45 = vpop.f32.mrf.mxu0  ;;  %v1647_v21 = vpop.f32.mrf.mxu1 }
 0x236   :  { %2115 = vmatpush.bf16.msra.mxu0 %v3367_v19 }
 0x237   :  { %v1791_v33 = vmax.f32 %v1715_v42, 0.0 }
 0x23c   :  { %v1716_v13 = vpop.f32.mrf.mxu2 }
 0x23d   :  { %v1717_v57 = vadd.f32 %v1716_v13, %v4171_v53  ;;  %v2774_v53 = vld [vmem:[%s4846_s0 + $0x280] sm:$0xf]  ;;  %v3379_v13 = vld [vmem:[%s4850_s7 + $0x30] sm:$0xff] }
 0x23e   :  { %v2775_v51 = vor.u32 %v3279_v9, %v2774_v53  ;;  %2316 = vmatpush.bf16.msra.mxu1 %v3379_v13 }
 0x23f   :  { %v1792_v32 = vmax.f32 %v1717_v57, 0.0 }
 0x241   :  { %3094 = vmatmul.msk.bf16.gmra.mxu2 %vm1117_vm0, %v2747_v20  ;;  %v1822_v59 = vpack.c.bf16 %v1792_v32, %v1791_v33  ;;  %v1561_v20 = vpop.f32.mrf.mxu0  ;;  %v3286_v33 = vld [vmem:[%s4846_s0 + $0x2d0] sm:$0xf0] }
 0x243   :  { %1918 = vmatmul.bf16.gmra.mxu3 %v1822_v59 }
 0x244   :  { %v1719_v5 = vpop.f32.mrf.mxu2 }
 0x245   :  { %v1720_v44 = vadd.f32 %v1719_v5, %v4186_v25  ;;  %v4537_v25 = vpop.f32.mrf.mxu1 }
 0x247   :  { %v1793_v4 = vmax.f32 %v1720_v44, 0.0 }
 0x249   :  { %v1563_v44 = vpop.f32.mrf.mxu0 }
 0x24c   :  { %v1721_v63 = vpop.f32.mrf.mxu2 }
 0x24d   :  { %v1722_v36 = vadd.f32 %v1721_v63, %v4201_v39  ;;  %v2802_v39 = vld [vmem:[%s4846_s0 + $0x2b8] sm:$0xf] }
 0x24e   :  { %v2803_v19 = vor.u32 %v3286_v33, %v2802_v39 }
 0x24f   :  { %v1794_v0 = vmax.f32 %v1722_v36, 0.0  ;;  %v1465_v36 = vadd.f32 %v4257_v48, %v4266_v54  ;;  %v3293_v48 = vld [vmem:[%s4846_s0 + $0x308] sm:$0xf0] }
 0x251   :  { %3095 = vmatmul.msk.bf16.gmra.mxu2 %vm1117_vm0, %v2775_v51  ;;  %v1823_v42 = vpack.c.bf16 %v1794_v0, %v1793_v4  ;;  %v1652_v51 = vpop.f32.mrf.mxu1  ;;  %v1552_v0 = vadd.f32 %v4503_v52, %v4237_v35  ;;  %v4555_v13 = vpop.f32.mrf.mxu0 }
 0x253   :  { %1923 = vmatmul.bf16.gmra.mxu3 %v1823_v42  ;;  %v1641_v42 = vadd.f32 %v1640_v7, %v1552_v0  ;;  %v2858_v0 = vld [vmem:[%s4846_s0 + $0x328] sm:$0xf] }
 0x254   :  { %v1724_v57 = vpop.f32.mrf.mxu2 }
 0x255   :  { %v1725_v32 = vadd.f32 %v1724_v57, %v4219_v62  ;;  %v1554_v62 = vadd.f32 %v1553_v29, %v1465_v36  ;;  %v2830_v57 = vld [vmem:[%s4846_s0 + $0x2f0] sm:$0xf] }
 0x256   :  { %v2831_v29 = vor.u32 %v3293_v48, %v2830_v57 }
 0x257   :  { %v1795_v53 = vmax.f32 %v1725_v32, 0.0  ;;  %v1643_v54 = vadd.f32 %v1642_v12, %v1554_v62  ;;  %v3300_v62 = vld [vmem:[%s4846_s0 + $0x340] sm:$0xf0] }
 0x258   :  { %v2859_v57 = vor.u32 %v3300_v62, %v2858_v0  ;;  %v1567_v0 = vadd.f32 %v4555_v13, %v4339_v14 }
 0x259   :  { %v1655_v33 = vpop.f32.mrf.mxu1  ;;  %v1568_v12 = vpop.f32.mrf.mxu0 }
 0x25c   :  { %v1726_v59 = vpop.f32.mrf.mxu2 }
 0x25d   :  { %v1727_v5 = vadd.f32 %v1726_v59, %v4234_v24  ;;  %v3366_v24 = vld [vmem:[%s4849_s5 + $0x8] sm:$0xff] }
 0x25e   :  { %2116 = vmatpush.bf16.msra.mxu0 %v3366_v24 }
 0x25f   :  { %v1796_v9 = vmax.f32 %v1727_v5, 0.0  ;;  %v3378_v5 = vld [vmem:[%s4850_s7 + $0x28] sm:$0xff] }
 0x260   :  { %2317 = vmatpush.bf16.msra.mxu1 %v3378_v5 }
 0x261   :  { %3096 = vmatmul.msk.bf16.gmra.mxu2 %vm1117_vm0, %v2803_v19  ;;  %v1824_v63 = vpack.c.bf16 %v1796_v9, %v1795_v53  ;;  %v1470_v19 = vadd.f32 %v4292_v18, %v4301_v22  ;;  %v1557_v9 = vadd.f32 %v4518_v23, %v4272_v10  ;;  %v1657_v36 = vpop.f32.mrf.mxu1  ;;  %v1571_v48 = vpop.f32.mrf.mxu0 }
 0x263   :  { %1928 = vmatmul.bf16.gmra.mxu3 %v1824_v63  ;;  %v1559_v63 = vadd.f32 %v1558_v45, %v1470_v19  ;;  %v1475_v45 = vadd.f32 %v4324_v60, %v4333_v2  ;;  %v3307_v60 = vld [vmem:[%s4846_s0 + $0x378] sm:$0xf0] }
 0x264   :  { %v1729_v4 = vpop.f32.mrf.mxu2 }
 0x265   :  { %v1730_v39 = vadd.f32 %v1729_v4, %v1641_v42  ;;  %v1646_v4 = vadd.f32 %v4520_v40, %v1557_v9  ;;  %v1648_v18 = vadd.f32 %v1647_v21, %v1559_v63  ;;  %v3365_v21 = vld [vmem:[%s4849_s5] sm:$0xff] }
 0x266   :  { %2117 = vmatpush.bf16.msra.mxu0 %v3365_v21 }
 0x267   :  { %v1797_v32 = vmax.f32 %v1730_v39, 0.0 }
 0x269   :  { %v1660_v40 = vpop.f32.mrf.mxu1 }
 0x26c   :  { %v1731_v35 = vpop.f32.mrf.mxu2 }
 0x26d   :  { %v1732_v52 = vadd.f32 %v1731_v35, %v1643_v54  ;;  %v1562_v35 = vadd.f32 %v1561_v20, %v4304_v28 }
 0x26f   :  { %v1798_v59 = vmax.f32 %v1732_v52, 0.0  ;;  %v1564_v52 = vadd.f32 %v1563_v44, %v1475_v45 }
 0x271   :  { %v1825_v7 = vpack.c.bf16 %v1798_v59, %v1797_v32  ;;  %3097 = vmatmul.msk.bf16.gmra.mxu2 %vm1117_vm0, %v2831_v29  ;;  %v1573_v29 = vpop.f32.mrf.mxu0  ;;  %v1651_v32 = vadd.f32 %v4537_v25, %v1562_v35  ;;  %v2886_v59 = vld [vmem:[%s4846_s0 + $0x360] sm:$0xf]  ;;  %v1653_v2 = vadd.f32 %v1652_v51, %v1564_v52  ;;  %v1662_v28 = vpop.f32.mrf.mxu1  ;;  %v1572_v52 = vadd.f32 %v1571_v48, %v4357_v41 }
 0x272   :  { %v2887_v5 = vor.u32 %v3307_v60, %v2886_v59  ;;  %v3377_v25 = vld [vmem:[%s4850_s7 + $0x20] sm:$0xff]  ;;  %v4603_v60 = vpop.f32.mrf.mxu3  ;;  %v1490_v41 = vadd.f32 %v4383_v43, %v4386_v8 }
 0x273   :  { %1933 = vmatmul.bf16.gmra.mxu3 %v1825_v7  ;;  %2318 = vmatpush.bf16.msra.mxu1 %v3377_v25 }
 0x274   :  { %v1734_v53 = vpop.f32.mrf.mxu2 }
 0x275   :  { %v1735_v22 = vadd.f32 %v1734_v53, %v1646_v4  ;;  %v1480_v4 = vadd.f32 %v4347_v27, %v4350_v26  ;;  %v1485_v27 = vadd.f32 %v4365_v15, %v4368_v37  ;;  %v3376_v15 = vld [vmem:[%s4850_s7 + $0x18] sm:$0xff] }
 0x277   :  { %v1799_v54 = vmax.f32 %v1735_v22, 0.0  ;;  %v1656_v22 = vadd.f32 %v1655_v33, %v1567_v0  ;;  %v1574_v13 = vadd.f32 %v1573_v29, %v1485_v27  ;;  %2319 = vmatpush.bf16.msra.mxu1 %v3376_v15 }
 0x279   :  { %v1576_v63 = vpop.f32.mrf.mxu0  ;;  %v1665_v62 = vpop.f32.mrf.mxu1 }
 0x27c   :  { %v1736_v24 = vpop.f32.mrf.mxu2 }
 0x27d   :  { %v1737_v42 = vadd.f32 %v1736_v24, %v1648_v18  ;;  %v1569_v18 = vadd.f32 %v1568_v12, %v1480_v4  ;;  %v1661_v12 = vadd.f32 %v1660_v40, %v1572_v52  ;;  %v1577_v40 = vadd.f32 %v1576_v63, %v4375_v58 }
 0x27f   :  { %v1800_v10 = vmax.f32 %v1737_v42, 0.0  ;;  %v1658_v24 = vadd.f32 %v1657_v36, %v1569_v18  ;;  %v1663_v36 = vadd.f32 %v1662_v28, %v1574_v13 }
 0x281   :  { %v1826_v23 = vpack.c.bf16 %v1800_v10, %v1799_v54  ;;  %3098 = vmatmul.msk.bf16.gmra.mxu2 %vm1117_vm0, %v2859_v57  ;;  %v1578_v57 = vpop.f32.mrf.mxu0 }
 0x282   :  { %v1579_v28 = vadd.f32 %v1578_v57, %v1490_v41 }
 0x283   :  { %1938 = vmatmul.bf16.gmra.mxu3 %v1826_v23 }
 0x284   :  { %v1739_v39 = vpop.f32.mrf.mxu2 }
 0x285   :  { %v1740_v7 = vadd.f32 %v1739_v39, %v1651_v32  ;;  %v1667_v39 = vpop.f32.mrf.mxu1 }
 0x287   :  { %v1801_v19 = vmax.f32 %v1740_v7, 0.0 }
 0x289   :  { %v1581_v14 = vpop.f32.mrf.mxu0 }
 0x28c   :  { %v1741_v20 = vpop.f32.mrf.mxu2 }
 0x28d   :  { %v1742_v44 = vadd.f32 %v1741_v20, %v1653_v2  ;;  %v1670_v33 = vpop.f32.mrf.mxu1 }
 0x28f   :  { %v1802_v53 = vmax.f32 %v1742_v44, 0.0 }
 0x291   :  { %v1827_v9 = vpack.c.bf16 %v1802_v53, %v1801_v19  ;;  %3099 = vmatmul.msk.bf16.gmra.mxu2 %vm1117_vm0, %v2887_v5  ;;  %v1583_v20 = vpop.f32.mrf.mxu0  ;;  %v1666_v5 = vadd.f32 %v1665_v62, %v1577_v40  ;;  %v4614_v19 = vld [vmem:[%s4851_s4] ss:$0 sm:$0xff] }
 0x293   :  { %1943 = vmatmul.bf16.gmra.mxu3 %v1827_v9  ;;  %v1668_v9 = vadd.f32 %v1667_v39, %v1579_v28 }
 0x294   :  { %v1744_v51 = vpop.f32.mrf.mxu2 }
 0x295   :  { %v1745_v42 = vadd.f32 %v1744_v51, %v1656_v22  ;;  %v1672_v37 = vpop.f32.mrf.mxu1 }
 0x297   :  { %v1803_v23 = vmax.f32 %v1745_v42, 0.0  ;;  %v1495_v42 = vadd.f32 %v4401_v61, %v4404_v30 }
 0x299   :  { %v1586_v53 = vpop.f32.mrf.mxu0  ;;  %v1584_v39 = vadd.f32 %v1583_v20, %v1495_v42  ;;  %v1500_v20 = vadd.f32 %v4419_v38, %v4422_v50 }
 0x29a   :  { %v1587_v41 = vadd.f32 %v1586_v53, %v4411_v46 }
 0x29c   :  { %v1746_v54 = vpop.f32.mrf.mxu2 }
 0x29d   :  { %v1747_v10 = vadd.f32 %v1746_v54, %v1658_v24  ;;  %v1675_v51 = vpop.f32.mrf.mxu1 }
 0x29f   :  { %v1804_v45 = vmax.f32 %v1747_v10, 0.0 }
 0x2a1   :  { %v1828_v35 = vpack.c.bf16 %v1804_v45, %v1803_v23  ;;  %v1588_v54 = vpop.f32.mrf.mxu0  ;;  %v1582_v23 = vadd.f32 %v1581_v14, %v4393_v3  ;;  %v3375_v14 = vld [vmem:[%s4850_s7 + $0x10] sm:$0xff] }
 0x2a2   :  { %2320 = vmatpush.bf16.msra.mxu1 %v3375_v14 }
 0x2a3   :  { %1948 = vmatmul.bf16.gmra.mxu3 %v1828_v35  ;;  %v1671_v27 = vadd.f32 %v1670_v33, %v1582_v23 }
 0x2a4   :  { %v1749_v26 = vpop.f32.mrf.mxu2 }
 0x2a5   :  { %v1750_v21 = vadd.f32 %v1749_v26, %v1661_v12  ;;  %v1677_v35 = vpop.f32.mrf.mxu1  ;;  %v1673_v26 = vadd.f32 %v1672_v37, %v1584_v39 }
 0x2a7   :  { %v1805_v2 = vmax.f32 %v1750_v21, 0.0 }
 0x2a9   :  { %v1591_v21 = vpop.f32.mrf.mxu0 }
 0x2ac   :  { %v1751_v32 = vpop.f32.mrf.mxu2 }
 0x2ad   :  { %v1752_v59 = vadd.f32 %v1751_v32, %v1663_v36  ;;  %v1680_v33 = vpop.f32.mrf.mxu1 }
 0x2af   :  { %v1806_v7 = vmax.f32 %v1752_v59, 0.0 }
 0x2b1   :  { %v1829_v44 = vpack.c.bf16 %v1806_v7, %v1805_v2  ;;  %v1593_v40 = vpop.f32.mrf.mxu0 }
 0x2b3   :  { %1953 = vmatmul.bf16.gmra.mxu3 %v1829_v44 }
 0x2b4   :  { %v1754_v48 = vpop.f32.mrf.mxu2 }
 0x2b5   :  { %v1755_v25 = vadd.f32 %v1754_v48, %v1666_v5  ;;  %v1589_v48 = vadd.f32 %v1588_v54, %v1500_v20 }
 0x2b6   :  { %v1914_v29 = vpop.f32.mrf.mxu3 }
 0x2b7   :  { %v1915_v43 = vadd.f32 %v4614_v19, %v1914_v29  ;;  %v1807_v18 = vmax.f32 %v1755_v25, 0.0  ;;  %v1676_v29 = vadd.f32 %v1675_v51, %v1587_v41  ;;  %v1678_v28 = vadd.f32 %v1677_v35, %v1589_v48 }
 0x2b9   :  { %v1994_v63 = vmax.f32 %v1915_v43, 0.0  ;;  %v1596_v53 = vpop.f32.mrf.mxu0 }
 0x2bc   :  { %v1756_v4 = vpop.f32.mrf.mxu2 }
 0x2bd   :  { %v1757_v8 = vadd.f32 %v1756_v4, %v1668_v9  ;;  %v1682_v9 = vpop.f32.mrf.mxu1 }
 0x2be   :  { %v1916_v0 = vpop.f32.mrf.mxu3 }
 0x2bf   :  { %v1808_v22 = vmax.f32 %v1757_v8, 0.0  ;;  %v1917_v58 = vadd.f32 %v4614_v19, %v1916_v0 }
 0x2c1   :  { %v1830_v62 = vpack.c.bf16 %v1808_v22, %v1807_v18  ;;  %v1995_v24 = vmax.f32 %v1917_v58, 0.0  ;;  %v1505_v58 = vadd.f32 %v4437_v1, %v4440_v34 }
 0x2c3   :  { %v2026_v57 = vpack.c.bf16 %v1995_v24, %v1994_v63  ;;  %1958 = vmatmul.bf16.gmra.mxu3 %v1830_v62  ;;  %v1592_v62 = vadd.f32 %v1591_v21, %v4429_v56  ;;  %v1510_v21 = vadd.f32 %v4455_v31, %v4458_v6 }
 0x2c4   :  { %v1759_v10 = vpop.f32.mrf.mxu2 }
 0x2c5   :  { %2118 = vmatmul.bf16.vlgmr.msra.gmra.mxu0 %v2026_v57  ;;  %v1760_v52 = vadd.f32 %v1759_v10, %v1671_v27  ;;  %v1685_v24 = vpop.f32.mrf.mxu1  ;;  %v1594_v57 = vadd.f32 %v1593_v40, %v1505_v58  ;;  %v1681_v54 = vadd.f32 %v1680_v33, %v1592_v62 }
 0x2c6   :  { %v1919_v45 = vpop.f32.mrf.mxu3 }
 0x2c7   :  { %v1920_v12 = vadd.f32 %v4614_v19, %v1919_v45  ;;  %v1809_v61 = vmax.f32 %v1760_v52, 0.0  ;;  %v1683_v10 = vadd.f32 %v1682_v9, %v1594_v57  ;;  %v1598_v45 = vpop.f32.mrf.mxu0  ;;  %v1515_v9 = vadd.f32 %v4473_v55, %v4476_v49 }
 0x2c9   :  { %v1996_v2 = vmax.f32 %v1920_v12, 0.0 }
 0x2cc   :  { %v1761_v13 = vpop.f32.mrf.mxu2 }
 0x2cd   :  { %v1762_v36 = vadd.f32 %v1761_v13, %v1673_v26  ;;  %v1687_v13 = vpop.f32.mrf.mxu1 }
 0x2ce   :  { %v1921_v32 = vpop.f32.mrf.mxu3 }
 0x2cf   :  { %v1810_v30 = vmax.f32 %v1762_v36, 0.0  ;;  %v1922_v59 = vadd.f32 %v4614_v19, %v1921_v32 }
 0x2d1   :  { %v1831_v7 = vpack.c.bf16 %v1810_v30, %v1809_v61  ;;  %v1997_v3 = vmax.f32 %v1922_v59, 0.0  ;;  %v3374_v61 = vld [vmem:[%s4850_s7 + $0x8] sm:$0xff]  ;;  %v1597_v59 = vadd.f32 %v1596_v53, %v4447_v17 }
 0x2d2   :  { %2321 = vmatpush.bf16.msra.mxu1 %v3374_v61 }
 0x2d3   :  { %1963 = vmatmul.bf16.gmra.mxu3 %v1831_v7  ;;  %v2027_v44 = vpack.c.bf16 %v1997_v3, %v1996_v2  ;;  %v1601_v2 = vpop.f32.mrf.mxu0  ;;  %v1599_v3 = vadd.f32 %v1598_v45, %v1510_v21  ;;  %v1686_v14 = vadd.f32 %v1685_v24, %v1597_v59 }
 0x2d4   :  { %v1764_v15 = vpop.f32.mrf.mxu2 }
 0x2d5   :  { %2123 = vmatmul.bf16.gmra.mxu0 %v2027_v44  ;;  %v1765_v5 = vadd.f32 %v1764_v15, %v1676_v29  ;;  %v1690_v33 = vpop.f32.mrf.mxu1  ;;  %v1688_v20 = vadd.f32 %v1687_v13, %v1599_v3 }
 0x2d6   :  { %v1924_v37 = vpop.f32.mrf.mxu3 }
 0x2d7   :  { %v1925_v4 = vadd.f32 %v4614_v19, %v1924_v37  ;;  %v1811_v38 = vmax.f32 %v1765_v5, 0.0 }
 0x2d9   :  { %v1998_v18 = vmax.f32 %v1925_v4, 0.0 }
 0x2db   :  { %v1603_v29 = vpop.f32.mrf.mxu0 }
 0x2dc   :  { %v1766_v25 = vpop.f32.mrf.mxu2 }
 0x2dd   :  { %v1767_v43 = vadd.f32 %v1766_v25, %v1678_v28  ;;  %v1692_v4 = vpop.f32.mrf.mxu1 }
 0x2de   :  { %v1926_v8 = vpop.f32.mrf.mxu3 }
 0x2df   :  { %v1812_v50 = vmax.f32 %v1767_v43, 0.0  ;;  %v1927_v0 = vadd.f32 %v4614_v19, %v1926_v8  ;;  %v1602_v8 = vadd.f32 %v1601_v2, %v4462_v47 }
 0x2e1   :  { %v1832_v22 = vpack.c.bf16 %v1812_v50, %v1811_v38  ;;  %v1999_v46 = vmax.f32 %v1927_v0, 0.0  ;;  %v1604_v50 = vadd.f32 %v1603_v29, %v1515_v9  ;;  %v1691_v0 = vadd.f32 %v1690_v33, %v1602_v8 }
 0x2e3   :  { %1968 = vmatmul.bf16.gmra.mxu3 %v1832_v22  ;;  %v2028_v51 = vpack.c.bf16 %v1999_v46, %v1998_v18  ;;  %v1606_v18 = vpop.f32.mrf.mxu0  ;;  %v1693_v22 = vadd.f32 %v1692_v4, %v1604_v50 }
 0x2e4   :  { %v1769_v63 = vpop.f32.mrf.mxu2 }
 0x2e5   :  { %2128 = vmatmul.bf16.gmra.mxu0 %v2028_v51  ;;  %v1770_v23 = vadd.f32 %v1769_v63, %v1681_v54  ;;  %v1695_v63 = vpop.f32.mrf.mxu1  ;;  %v1520_v54 = vadd.f32 %v4603_v60, %v4489_v16 }
 0x2e6   :  { %v1929_v42 = vpop.f32.mrf.mxu3 }
 0x2e7   :  { %v1930_v35 = vadd.f32 %v4614_v19, %v1929_v42  ;;  %v1813_v52 = vmax.f32 %v1770_v23, 0.0  ;;  %v3373_v23 = vld [vmem:[%s4850_s7] sm:$0xff] }
 0x2e8   :  { %2322 = vmatpush.bf16.msra.mxu1 %v3373_v23 }
 0x2e9   :  { %v2000_v12 = vmax.f32 %v1930_v35, 0.0  ;;  %v1607_v35 = vadd.f32 %v1606_v18, %v4480_v11 }
 0x2eb   :  { %v1608_v45 = vpop.f32.mrf.mxu0 }
 0x2ec   :  { %v1771_v39 = vpop.f32.mrf.mxu2 }
 0x2ed   :  { %v1772_v27 = vadd.f32 %v1771_v39, %v1683_v10 }
 0x2ee   :  { %v1931_v26 = vpop.f32.mrf.mxu3 }
 0x2ef   :  { %v1814_v1 = vmax.f32 %v1772_v27, 0.0  ;;  %v1932_v34 = vadd.f32 %v4614_v19, %v1931_v26  ;;  %v1609_v26 = vadd.f32 %v1608_v45, %v1520_v54 }
 0x2f1   :  { %v1833_v56 = vpack.c.bf16 %v1814_v1, %v1813_v52  ;;  %v2001_v36 = vmax.f32 %v1932_v34, 0.0  ;;  %v1697_v52 = vpop.f32.mrf.mxu1  ;;  %v1696_v1 = vadd.f32 %v1695_v63, %v1607_v35 }
 0x2f2   :  { %v1698_v34 = vadd.f32 %v1697_v52, %v1609_v26 }
 0x2f3   :  { %1973 = vmatmul.bf16.gmra.mxu3 %v1833_v56  ;;  %v2029_v32 = vpack.c.bf16 %v2001_v36, %v2000_v12 }
 0x2f4   :  { %v1774_v30 = vpop.f32.mrf.mxu2 }
 0x2f5   :  { %2133 = vmatmul.bf16.gmra.mxu0 %v2029_v32  ;;  %v1775_v44 = vadd.f32 %v1774_v30, %v1686_v14 }
 0x2f6   :  { %v1934_v7 = vpop.f32.mrf.mxu3 }
 0x2f7   :  { %v1935_v31 = vadd.f32 %v4614_v19, %v1934_v7  ;;  %v1815_v37 = vmax.f32 %v1775_v44, 0.0 }
 0x2f9   :  { %v2002_v17 = vmax.f32 %v1935_v31, 0.0 }
 0x2fc   :  { %v1776_v15 = vpop.f32.mrf.mxu2 }
 0x2fd   :  { %v1777_v6 = vadd.f32 %v1776_v15, %v1688_v20 }
 0x2fe   :  { %v1936_v41 = vpop.f32.mrf.mxu3 }
 0x2ff   :  { %v1816_v48 = vmax.f32 %v1777_v6, 0.0  ;;  %v1937_v40 = vadd.f32 %v4614_v19, %v1936_v41 }
 0x301   :  { %v1834_v28 = vpack.c.bf16 %v1816_v48, %v1815_v37  ;;  %v2003_v5 = vmax.f32 %v1937_v40, 0.0 }
 0x303   :  { %v2030_v25 = vpack.c.bf16 %v2003_v5, %v2002_v17  ;;  %1978 = vmatmul.bf16.gmra.mxu3 %v1834_v28  ;;  %v4664_v17 = vld [vmem:[%s4852_s6] ss:$0 sm:$0xff] }
 0x304   :  { %v1779_v43 = vpop.f32.mrf.mxu2 }
 0x305   :  { %2138 = vmatmul.bf16.gmra.mxu0 %v2030_v25  ;;  %v1780_v46 = vadd.f32 %v1779_v43, %v1691_v0 }
 0x306   :  { %v1939_v38 = vpop.f32.mrf.mxu3 }
 0x307   :  { %v1940_v58 = vadd.f32 %v4614_v19, %v1939_v38  ;;  %v1817_v55 = vmax.f32 %v1780_v46, 0.0 }
 0x309   :  { %v2004_v42 = vmax.f32 %v1940_v58, 0.0 }
 0x30c   :  { %v1781_v53 = vpop.f32.mrf.mxu2 }
 0x30d   :  { %v1782_v51 = vadd.f32 %v1781_v53, %v1693_v22 }
 0x30e   :  { %v1941_v62 = vpop.f32.mrf.mxu3 }
 0x30f   :  { %v1818_v49 = vmax.f32 %v1782_v51, 0.0  ;;  %v1942_v24 = vadd.f32 %v4614_v19, %v1941_v62 }
 0x311   :  { %v1835_v57 = vpack.c.bf16 %v1818_v49, %v1817_v55  ;;  %v2005_v47 = vmax.f32 %v1942_v24, 0.0 }
 0x313   :  { %v2031_v10 = vpack.c.bf16 %v2005_v47, %v2004_v42  ;;  %1983 = vmatmul.bf16.gmra.mxu3 %v1835_v57 }
 0x314   :  { %v1784_v39 = vpop.f32.mrf.mxu2 }
 0x315   :  { %2143 = vmatmul.bf16.gmra.mxu0 %v2031_v10  ;;  %v1785_v13 = vadd.f32 %v1784_v39, %v1696_v1 }
 0x316   :  { %v1944_v27 = vpop.f32.mrf.mxu3 }
 0x317   :  { %v1945_v16 = vadd.f32 %v4614_v19, %v1944_v27  ;;  %v1819_v36 = vmax.f32 %v1785_v13, 0.0 }
 0x319   :  { %v2006_v61 = vmax.f32 %v1945_v16, 0.0 }
 0x31c   :  { %v1786_v12 = vpop.f32.mrf.mxu2 }
 0x31d   :  { %v1787_v60 = vadd.f32 %v1786_v12, %v1698_v34 }
 0x31e   :  { %v1946_v56 = vpop.f32.mrf.mxu3 }
 0x31f   :  { %v1820_v21 = vmax.f32 %v1787_v60, 0.0  ;;  %v1947_v32 = vadd.f32 %v4614_v19, %v1946_v56 }
 0x321   :  { %v1836_v30 = vpack.c.bf16 %v1820_v21, %v1819_v36  ;;  %v2007_v11 = vmax.f32 %v1947_v32, 0.0 }
 0x323   :  { %v2032_v59 = vpack.c.bf16 %v2007_v11, %v2006_v61  ;;  %1988 = vmatmul.bf16.gmra.mxu3 %v1836_v30 }
 0x325   :  { %2148 = vmatmul.bf16.gmra.mxu0 %v2032_v59 }
 0x326   :  { %v1949_v2 = vpop.f32.mrf.mxu3 }
 0x327   :  { %v1950_v7 = vadd.f32 %v4614_v19, %v1949_v2 }
 0x329   :  { %v2008_v33 = vmax.f32 %v1950_v7, 0.0 }
 0x32e   :  { %v1951_v3 = vpop.f32.mrf.mxu3 }
 0x32f   :  { %v1952_v14 = vadd.f32 %v4614_v19, %v1951_v3 }
 0x331   :  { %v2009_v20 = vmax.f32 %v1952_v14, 0.0 }
 0x333   :  { %v2033_v44 = vpack.c.bf16 %v2009_v20, %v2008_v33 }
 0x335   :  { %2153 = vmatmul.bf16.gmra.mxu0 %v2033_v44 }
 0x336   :  { %v1954_v15 = vpop.f32.mrf.mxu3 }
 0x337   :  { %v1955_v31 = vadd.f32 %v4614_v19, %v1954_v15 }
 0x339   :  { %v2010_v37 = vmax.f32 %v1955_v31, 0.0 }
 0x33e   :  { %v1956_v6 = vpop.f32.mrf.mxu3 }
 0x33f   :  { %v1957_v41 = vadd.f32 %v4614_v19, %v1956_v6 }
 0x341   :  { %v2011_v48 = vmax.f32 %v1957_v41, 0.0 }
 0x342   :  { %v2119_v40 = vpop.f32.mrf.mxu0 }
 0x343   :  { %v2034_v29 = vpack.c.bf16 %v2011_v48, %v2010_v37  ;;  %v2120_v5 = vadd.f32 %v4664_v17, %v2119_v40 }
 0x345   :  { %2158 = vmatmul.bf16.gmra.mxu0 %v2034_v29  ;;  %v2199_v4 = vmax.f32 %v2120_v5, 0.0 }
 0x346   :  { %v1959_v28 = vpop.f32.mrf.mxu3 }
 0x347   :  { %v1960_v43 = vadd.f32 %v4614_v19, %v1959_v28 }
 0x349   :  { %v2012_v18 = vmax.f32 %v1960_v43, 0.0 }
 0x34a   :  { %v2121_v9 = vpop.f32.mrf.mxu0 }
 0x34b   :  { %v2122_v25 = vadd.f32 %v4664_v17, %v2121_v9 }
 0x34d   :  { %v2200_v8 = vmax.f32 %v2122_v25, 0.0 }
 0x34e   :  { %v1961_v38 = vpop.f32.mrf.mxu3 }
 0x34f   :  { %v2231_v50 = vpack.c.bf16 %v2200_v8, %v2199_v4  ;;  %v1962_v0 = vadd.f32 %v4614_v19, %v1961_v38 }
 0x351   :  { %v2013_v22 = vmax.f32 %v1962_v0, 0.0  ;;  %2323 = vmatmul.bf16.vlgmr.msra.gmra.mxu1 %v2231_v50 }
 0x352   :  { %v2124_v46 = vpop.f32.mrf.mxu0 }
 0x353   :  { %v2035_v53 = vpack.c.bf16 %v2013_v22, %v2012_v18  ;;  %v2125_v51 = vadd.f32 %v4664_v17, %v2124_v46 }
 0x355   :  { %2163 = vmatmul.bf16.gmra.mxu0 %v2035_v53  ;;  %v2201_v55 = vmax.f32 %v2125_v51, 0.0 }
 0x356   :  { %v1964_v58 = vpop.f32.mrf.mxu3 }
 0x357   :  { %v1965_v49 = vadd.f32 %v4614_v19, %v1964_v58 }
 0x359   :  { %v2014_v54 = vmax.f32 %v1965_v49, 0.0 }
 0x35a   :  { %v2126_v63 = vpop.f32.mrf.mxu0 }
 0x35b   :  { %v2127_v62 = vadd.f32 %v4664_v17, %v2126_v63 }
 0x35d   :  { %v2202_v24 = vmax.f32 %v2127_v62, 0.0 }
 0x35e   :  { %v1966_v42 = vpop.f32.mrf.mxu3 }
 0x35f   :  { %v1967_v57 = vadd.f32 %v4614_v19, %v1966_v42  ;;  %v2232_v47 = vpack.c.bf16 %v2202_v24, %v2201_v55 }
 0x361   :  { %v2015_v10 = vmax.f32 %v1967_v57, 0.0  ;;  %2328 = vmatmul.bf16.gmra.mxu1 %v2232_v47 }
 0x362   :  { %v2129_v23 = vpop.f32.mrf.mxu0 }
 0x363   :  { %v2036_v45 = vpack.c.bf16 %v2015_v10, %v2014_v54  ;;  %v2130_v35 = vadd.f32 %v4664_v17, %v2129_v23 }
 0x365   :  { %2168 = vmatmul.bf16.gmra.mxu0 %v2036_v45  ;;  %v2203_v52 = vmax.f32 %v2130_v35, 0.0 }
 0x366   :  { %v1969_v39 = vpop.f32.mrf.mxu3 }
 0x367   :  { %v1970_v1 = vadd.f32 %v4614_v19, %v1969_v39 }
 0x369   :  { %v2016_v60 = vmax.f32 %v1970_v1, 0.0 }
 0x36a   :  { %v2131_v27 = vpop.f32.mrf.mxu0 }
 0x36b   :  { %v2132_v26 = vadd.f32 %v4664_v17, %v2131_v27 }
 0x36d   :  { %v2204_v34 = vmax.f32 %v2132_v26, 0.0 }
 0x36e   :  { %v1971_v13 = vpop.f32.mrf.mxu3 }
 0x36f   :  { %v1972_v12 = vadd.f32 %v4614_v19, %v1971_v13  ;;  %v2233_v16 = vpack.c.bf16 %v2204_v34, %v2203_v52 }
 0x371   :  { %v2017_v56 = vmax.f32 %v1972_v12, 0.0  ;;  %2333 = vmatmul.bf16.gmra.mxu1 %v2233_v16 }
 0x372   :  { %v2134_v36 = vpop.f32.mrf.mxu0 }
 0x373   :  { %v2037_v21 = vpack.c.bf16 %v2017_v56, %v2016_v60  ;;  %v2135_v61 = vadd.f32 %v4664_v17, %v2134_v36 }
 0x375   :  { %2173 = vmatmul.bf16.gmra.mxu0 %v2037_v21  ;;  %v2205_v59 = vmax.f32 %v2135_v61, 0.0 }
 0x376   :  { %v1974_v32 = vpop.f32.mrf.mxu3 }
 0x377   :  { %v1975_v2 = vadd.f32 %v4614_v19, %v1974_v32 }
 0x379   :  { %v2018_v20 = vmax.f32 %v1975_v2, 0.0 }
 0x37a   :  { %v2136_v30 = vpop.f32.mrf.mxu0 }
 0x37b   :  { %v2137_v11 = vadd.f32 %v4664_v17, %v2136_v30 }
 0x37d   :  { %v2206_v7 = vmax.f32 %v2137_v11, 0.0  ;;  %v4701_v11 = vld [vmem:[%s4853_s8] ss:$0 sm:$0xff] }
 0x37e   :  { %v1976_v3 = vpop.f32.mrf.mxu3 }
 0x37f   :  { %v1977_v14 = vadd.f32 %v4614_v19, %v1976_v3  ;;  %v2234_v33 = vpack.c.bf16 %v2206_v7, %v2205_v59 }
 0x381   :  { %v2019_v44 = vmax.f32 %v1977_v14, 0.0  ;;  %2338 = vmatmul.bf16.gmra.mxu1 %v2234_v33 }
 0x382   :  { %v2139_v15 = vpop.f32.mrf.mxu0 }
 0x383   :  { %v2038_v31 = vpack.c.bf16 %v2019_v44, %v2018_v20  ;;  %v2140_v41 = vadd.f32 %v4664_v17, %v2139_v15 }
 0x385   :  { %2178 = vmatmul.bf16.gmra.mxu0 %v2038_v31  ;;  %v2207_v40 = vmax.f32 %v2140_v41, 0.0 }
 0x386   :  { %v1979_v6 = vpop.f32.mrf.mxu3 }
 0x387   :  { %v1980_v29 = vadd.f32 %v4614_v19, %v1979_v6 }
 0x389   :  { %v2020_v4 = vmax.f32 %v1980_v29, 0.0 }
 0x38a   :  { %v2141_v37 = vpop.f32.mrf.mxu0 }
 0x38b   :  { %v2142_v48 = vadd.f32 %v4664_v17, %v2141_v37 }
 0x38d   :  { %v2208_v28 = vmax.f32 %v2142_v48, 0.0 }
 0x38e   :  { %v1981_v5 = vpop.f32.mrf.mxu3 }
 0x38f   :  { %v2235_v9 = vpack.c.bf16 %v2208_v28, %v2207_v40  ;;  %v1982_v25 = vadd.f32 %v4614_v19, %v1981_v5 }
 0x391   :  { %v2021_v43 = vmax.f32 %v1982_v25, 0.0  ;;  %2343 = vmatmul.bf16.gmra.mxu1 %v2235_v9 }
 0x392   :  { %v2144_v8 = vpop.f32.mrf.mxu0 }
 0x393   :  { %v2039_v38 = vpack.c.bf16 %v2021_v43, %v2020_v4  ;;  %v2145_v0 = vadd.f32 %v4664_v17, %v2144_v8 }
 0x395   :  { %2183 = vmatmul.bf16.gmra.mxu0 %v2039_v38  ;;  %v2209_v46 = vmax.f32 %v2145_v0, 0.0 }
 0x396   :  { %v1984_v50 = vpop.f32.mrf.mxu3 }
 0x397   :  { %v1985_v53 = vadd.f32 %v4614_v19, %v1984_v50 }
 0x399   :  { %v2022_v55 = vmax.f32 %v1985_v53, 0.0 }
 0x39a   :  { %v2146_v18 = vpop.f32.mrf.mxu0 }
 0x39b   :  { %v2147_v22 = vadd.f32 %v4664_v17, %v2146_v18 }
 0x39d   :  { %v2210_v58 = vmax.f32 %v2147_v22, 0.0 }
 0x39e   :  { %v1986_v51 = vpop.f32.mrf.mxu3 }
 0x39f   :  { %v2236_v63 = vpack.c.bf16 %v2210_v58, %v2209_v46  ;;  %v1987_v62 = vadd.f32 %v4614_v19, %v1986_v51 }
 0x3a1   :  { %v2023_v49 = vmax.f32 %v1987_v62, 0.0  ;;  %2348 = vmatmul.bf16.gmra.mxu1 %v2236_v63 }
 0x3a2   :  { %v2149_v24 = vpop.f32.mrf.mxu0 }
 0x3a3   :  { %v2040_v42 = vpack.c.bf16 %v2023_v49, %v2022_v55  ;;  %v2150_v47 = vadd.f32 %v4664_v17, %v2149_v24 }
 0x3a5   :  { %2188 = vmatmul.bf16.gmra.mxu0 %v2040_v42  ;;  %v2211_v23 = vmax.f32 %v2150_v47, 0.0 }
 0x3a6   :  { %v1989_v57 = vpop.f32.mrf.mxu3 }
 0x3a7   :  { %v1990_v45 = vadd.f32 %v4614_v19, %v1989_v57 }
 0x3a9   :  { %v2024_v52 = vmax.f32 %v1990_v45, 0.0 }
 0x3aa   :  { %v2151_v54 = vpop.f32.mrf.mxu0 }
 0x3ab   :  { %v2152_v10 = vadd.f32 %v4664_v17, %v2151_v54 }
 0x3ad   :  { %v2212_v39 = vmax.f32 %v2152_v10, 0.0 }
 0x3ae   :  { %v1991_v35 = vpop.f32.mrf.mxu3 }
 0x3af   :  { %v2237_v27 = vpack.c.bf16 %v2212_v39, %v2211_v23  ;;  %v1992_v26 = vadd.f32 %v4614_v19, %v1991_v35 }
 0x3b1   :  { %v2025_v1 = vmax.f32 %v1992_v26, 0.0  ;;  %2353 = vmatmul.bf16.gmra.mxu1 %v2237_v27 }
 0x3b2   :  { %v2154_v34 = vpop.f32.mrf.mxu0 }
 0x3b3   :  { %v2041_v13 = vpack.c.bf16 %v2025_v1, %v2024_v52  ;;  %v2155_v12 = vadd.f32 %v4664_v17, %v2154_v34 }
 0x3b5   :  { %2193 = vmatmul.bf16.gmra.mxu0 %v2041_v13  ;;  %v2213_v56 = vmax.f32 %v2155_v12, 0.0 }
 0x3ba   :  { %v2156_v16 = vpop.f32.mrf.mxu0 }
 0x3bb   :  { %v2157_v60 = vadd.f32 %v4664_v17, %v2156_v16 }
 0x3bd   :  { %v2214_v36 = vmax.f32 %v2157_v60, 0.0 }
 0x3bf   :  { %v2238_v21 = vpack.c.bf16 %v2214_v36, %v2213_v56 }
 0x3c1   :  { %2358 = vmatmul.bf16.gmra.mxu1 %v2238_v21 }
 0x3c2   :  { %v2159_v32 = vpop.f32.mrf.mxu0 }
 0x3c3   :  { %v2160_v61 = vadd.f32 %v4664_v17, %v2159_v32 }
 0x3c5   :  { %v2215_v59 = vmax.f32 %v2160_v61, 0.0 }
 0x3ca   :  { %v2161_v30 = vpop.f32.mrf.mxu0 }
 0x3cb   :  { %v2162_v19 = vadd.f32 %v4664_v17, %v2161_v30 }
 0x3cd   :  { %v2216_v2 = vmax.f32 %v2162_v19, 0.0 }
 0x3ce   :  { %v2324_v7 = vpop.f32.mrf.mxu1 }
 0x3cf   :  { %v2239_v3 = vpack.c.bf16 %v2216_v2, %v2215_v59  ;;  %v2325_v14 = vadd.f32 %v4701_v11, %v2324_v7 }
 0x3d1   :  { %2404 = vst [vmem:[%s4854_s9] sm:$0xff] %v2325_v14  ;;  %2363 = vmatmul.bf16.gmra.mxu1 %v2239_v3 }
 0x3d2   :  { %v2164_v33 = vpop.f32.mrf.mxu0 }
 0x3d3   :  { %v2165_v15 = vadd.f32 %v4664_v17, %v2164_v33 }
 0x3d5   :  { %v2217_v41 = vmax.f32 %v2165_v15, 0.0 }
 0x3d6   :  { %v2326_v20 = vpop.f32.mrf.mxu1 }
 0x3d7   :  { %v2327_v44 = vadd.f32 %v4701_v11, %v2326_v20 }
 0x3d9   :  { %2405 = vst [vmem:[%s4854_s9 + $0x8] sm:$0xff] %v2327_v44 }
 0x3da   :  { %v2166_v31 = vpop.f32.mrf.mxu0 }
 0x3db   :  { %v2167_v6 = vadd.f32 %v4664_v17, %v2166_v31 }
 0x3dd   :  { %v2218_v37 = vmax.f32 %v2167_v6, 0.0 }
 0x3de   :  { %v2329_v48 = vpop.f32.mrf.mxu1 }
 0x3df   :  { %v2240_v40 = vpack.c.bf16 %v2218_v37, %v2217_v41  ;;  %v2330_v29 = vadd.f32 %v4701_v11, %v2329_v48 }
 0x3e1   :  { %2406 = vst [vmem:[%s4854_s9 + $0x10] sm:$0xff] %v2330_v29  ;;  %2368 = vmatmul.bf16.gmra.mxu1 %v2240_v40 }
 0x3e2   :  { %v2169_v28 = vpop.f32.mrf.mxu0 }
 0x3e3   :  { %v2170_v25 = vadd.f32 %v4664_v17, %v2169_v28 }
 0x3e5   :  { %v2219_v8 = vmax.f32 %v2170_v25, 0.0 }
 0x3e6   :  { %v2331_v5 = vpop.f32.mrf.mxu1 }
 0x3e7   :  { %v2332_v9 = vadd.f32 %v4701_v11, %v2331_v5 }
 0x3e9   :  { %2407 = vst [vmem:[%s4854_s9 + $0x18] sm:$0xff] %v2332_v9 }
 0x3ea   :  { %v2171_v4 = vpop.f32.mrf.mxu0 }
 0x3eb   :  { %v2172_v43 = vadd.f32 %v4664_v17, %v2171_v4 }
 0x3ed   :  { %v2220_v38 = vmax.f32 %v2172_v43, 0.0 }
 0x3ee   :  { %v2334_v50 = vpop.f32.mrf.mxu1 }
 0x3ef   :  { %v2241_v0 = vpack.c.bf16 %v2220_v38, %v2219_v8  ;;  %v2335_v18 = vadd.f32 %v4701_v11, %v2334_v50 }
 0x3f1   :  { %2408 = vst [vmem:[%s4854_s9 + $0x20] sm:$0xff] %v2335_v18  ;;  %2373 = vmatmul.bf16.gmra.mxu1 %v2241_v0 }
 0x3f2   :  { %v2174_v22 = vpop.f32.mrf.mxu0 }
 0x3f3   :  { %v2175_v58 = vadd.f32 %v4664_v17, %v2174_v22 }
 0x3f5   :  { %v2221_v62 = vmax.f32 %v2175_v58, 0.0 }
 0x3f6   :  { %v2336_v46 = vpop.f32.mrf.mxu1 }
 0x3f7   :  { %v2337_v53 = vadd.f32 %v4701_v11, %v2336_v46 }
 0x3f9   :  { %2409 = vst [vmem:[%s4854_s9 + $0x28] sm:$0xff] %v2337_v53 }
 0x3fa   :  { %v2176_v51 = vpop.f32.mrf.mxu0 }
 0x3fb   :  { %v2177_v63 = vadd.f32 %v4664_v17, %v2176_v51 }
 0x3fd   :  { %v2222_v55 = vmax.f32 %v2177_v63, 0.0 }
 0x3fe   :  { %v2339_v49 = vpop.f32.mrf.mxu1 }
 0x3ff   :  { %v2242_v24 = vpack.c.bf16 %v2222_v55, %v2221_v62  ;;  %v2340_v42 = vadd.f32 %v4701_v11, %v2339_v49 }
 0x401   :  { %2410 = vst [vmem:[%s4854_s9 + $0x30] sm:$0xff] %v2340_v42  ;;  %2378 = vmatmul.bf16.gmra.mxu1 %v2242_v24 }
 0x402   :  { %v2179_v57 = vpop.f32.mrf.mxu0 }
 0x403   :  { %v2180_v10 = vadd.f32 %v4664_v17, %v2179_v57 }
 0x405   :  { %v2223_v39 = vmax.f32 %v2180_v10, 0.0 }
 0x406   :  { %v2341_v47 = vpop.f32.mrf.mxu1 }
 0x407   :  { %v2342_v54 = vadd.f32 %v4701_v11, %v2341_v47 }
 0x409   :  { %2411 = vst [vmem:[%s4854_s9 + $0x38] sm:$0xff] %v2342_v54 }
 0x40a   :  { %v2181_v23 = vpop.f32.mrf.mxu0 }
 0x40b   :  { %v2182_v45 = vadd.f32 %v4664_v17, %v2181_v23 }
 0x40d   :  { %v2224_v35 = vmax.f32 %v2182_v45, 0.0 }
 0x40e   :  { %v2344_v27 = vpop.f32.mrf.mxu1 }
 0x40f   :  { %v2243_v26 = vpack.c.bf16 %v2224_v35, %v2223_v39  ;;  %v2345_v52 = vadd.f32 %v4701_v11, %v2344_v27 }
 0x411   :  { %2412 = vst [vmem:[%s4854_s9 + $0x40] sm:$0xff] %v2345_v52  ;;  %2383 = vmatmul.bf16.gmra.mxu1 %v2243_v26 }
 0x412   :  { %v2184_v1 = vpop.f32.mrf.mxu0 }
 0x413   :  { %v2185_v12 = vadd.f32 %v4664_v17, %v2184_v1 }
 0x415   :  { %v2225_v56 = vmax.f32 %v2185_v12, 0.0 }
 0x416   :  { %v2346_v34 = vpop.f32.mrf.mxu1 }
 0x417   :  { %v2347_v13 = vadd.f32 %v4701_v11, %v2346_v34 }
 0x419   :  { %2413 = vst [vmem:[%s4854_s9 + $0x48] sm:$0xff] %v2347_v13 }
 0x41a   :  { %v2186_v16 = vpop.f32.mrf.mxu0 }
 0x41b   :  { %v2187_v60 = vadd.f32 %v4664_v17, %v2186_v16 }
 0x41d   :  { %v2226_v36 = vmax.f32 %v2187_v60, 0.0 }
 0x41e   :  { %v2349_v21 = vpop.f32.mrf.mxu1 }
 0x41f   :  { %v2244_v32 = vpack.c.bf16 %v2226_v36, %v2225_v56  ;;  %v2350_v61 = vadd.f32 %v4701_v11, %v2349_v21 }
 0x421   :  { %2414 = vst [vmem:[%s4854_s9 + $0x50] sm:$0xff] %v2350_v61  ;;  %2388 = vmatmul.bf16.gmra.mxu1 %v2244_v32 }
 0x422   :  { %v2189_v30 = vpop.f32.mrf.mxu0 }
 0x423   :  { %v2190_v2 = vadd.f32 %v4664_v17, %v2189_v30 }
 0x425   :  { %v2227_v14 = vmax.f32 %v2190_v2, 0.0 }
 0x426   :  { %v2351_v19 = vpop.f32.mrf.mxu1 }
 0x427   :  { %v2352_v59 = vadd.f32 %v4701_v11, %v2351_v19 }
 0x429   :  { %2415 = vst [vmem:[%s4854_s9 + $0x58] sm:$0xff] %v2352_v59 }
 0x42a   :  { %v2191_v7 = vpop.f32.mrf.mxu0 }
 0x42b   :  { %v2192_v3 = vadd.f32 %v4664_v17, %v2191_v7 }
 0x42d   :  { %v2228_v33 = vmax.f32 %v2192_v3, 0.0 }
 0x42e   :  { %v2354_v20 = vpop.f32.mrf.mxu1 }
 0x42f   :  { %v2245_v44 = vpack.c.bf16 %v2228_v33, %v2227_v14  ;;  %v2355_v15 = vadd.f32 %v4701_v11, %v2354_v20 }
 0x431   :  { %2416 = vst [vmem:[%s4854_s9 + $0x60] sm:$0xff] %v2355_v15  ;;  %2393 = vmatmul.bf16.gmra.mxu1 %v2245_v44 }
 0x432   :  { %v2194_v31 = vpop.f32.mrf.mxu0 }
 0x433   :  { %v2195_v37 = vadd.f32 %v4664_v17, %v2194_v31 }
 0x435   :  { %v2229_v29 = vmax.f32 %v2195_v37, 0.0 }
 0x436   :  { %v2356_v6 = vpop.f32.mrf.mxu1 }
 0x437   :  { %v2357_v41 = vadd.f32 %v4701_v11, %v2356_v6 }
 0x439   :  { %2417 = vst [vmem:[%s4854_s9 + $0x68] sm:$0xff] %v2357_v41 }
 0x43a   :  { %v2196_v48 = vpop.f32.mrf.mxu0 }
 0x43b   :  { %v2197_v40 = vadd.f32 %v4664_v17, %v2196_v48 }
 0x43d   :  { %v2230_v28 = vmax.f32 %v2197_v40, 0.0 }
 0x43e   :  { %v2359_v5 = vpop.f32.mrf.mxu1 }
 0x43f   :  { %v2246_v9 = vpack.c.bf16 %v2230_v28, %v2229_v29  ;;  %v2360_v25 = vadd.f32 %v4701_v11, %v2359_v5 }
 0x441   :  { %2418 = vst [vmem:[%s4854_s9 + $0x70] sm:$0xff] %v2360_v25  ;;  %2398 = vmatmul.bf16.gmra.mxu1 %v2246_v9 }
 0x446   :  { %v2361_v4 = vpop.f32.mrf.mxu1 }
 0x447   :  { %v2362_v43 = vadd.f32 %v4701_v11, %v2361_v4 }
 0x449   :  { %2419 = vst [vmem:[%s4854_s9 + $0x78] sm:$0xff] %v2362_v43 }
 0x44e   :  { %v2364_v8 = vpop.f32.mrf.mxu1 }
 0x44f   :  { %v2365_v17 = vadd.f32 %v4701_v11, %v2364_v8 }
 0x451   :  { %2420 = vst [vmem:[%s4854_s9 + $0x80] sm:$0xff] %v2365_v17 }
 0x456   :  { %v2366_v38 = vpop.f32.mrf.mxu1 }
 0x457   :  { %v2367_v50 = vadd.f32 %v4701_v11, %v2366_v38 }
 0x459   :  { %2421 = vst [vmem:[%s4854_s9 + $0x88] sm:$0xff] %v2367_v50 }
 0x45e   :  { %v2369_v0 = vpop.f32.mrf.mxu1 }
 0x45f   :  { %v2370_v18 = vadd.f32 %v4701_v11, %v2369_v0 }
 0x461   :  { %2422 = vst [vmem:[%s4854_s9 + $0x90] sm:$0xff] %v2370_v18 }
 0x466   :  { %v2371_v22 = vpop.f32.mrf.mxu1 }
 0x467   :  { %v2372_v46 = vadd.f32 %v4701_v11, %v2371_v22 }
 0x469   :  { %2423 = vst [vmem:[%s4854_s9 + $0x98] sm:$0xff] %v2372_v46 }
 0x46e   :  { %v2374_v53 = vpop.f32.mrf.mxu1 }
 0x46f   :  { %v2375_v58 = vadd.f32 %v4701_v11, %v2374_v53 }
 0x471   :  { %2424 = vst [vmem:[%s4854_s9 + $0xa0] sm:$0xff] %v2375_v58 }
 0x476   :  { %v2376_v51 = vpop.f32.mrf.mxu1 }
 0x477   :  { %v2377_v63 = vadd.f32 %v4701_v11, %v2376_v51 }
 0x479   :  { %2425 = vst [vmem:[%s4854_s9 + $0xa8] sm:$0xff] %v2377_v63 }
 0x47e   :  { %v2379_v62 = vpop.f32.mrf.mxu1 }
 0x47f   :  { %v2380_v55 = vadd.f32 %v4701_v11, %v2379_v62 }
 0x481   :  { %2426 = vst [vmem:[%s4854_s9 + $0xb0] sm:$0xff] %v2380_v55 }
 0x486   :  { %v2381_v49 = vpop.f32.mrf.mxu1 }
 0x487   :  { %v2382_v24 = vadd.f32 %v4701_v11, %v2381_v49 }
 0x489   :  { %2427 = vst [vmem:[%s4854_s9 + $0xb8] sm:$0xff] %v2382_v24 }
 0x48e   :  { %v2384_v42 = vpop.f32.mrf.mxu1 }
 0x48f   :  { %v2385_v57 = vadd.f32 %v4701_v11, %v2384_v42 }
 0x491   :  { %2428 = vst [vmem:[%s4854_s9 + $0xc0] sm:$0xff] %v2385_v57 }
 0x496   :  { %v2386_v47 = vpop.f32.mrf.mxu1 }
 0x497   :  { %v2387_v54 = vadd.f32 %v4701_v11, %v2386_v47 }
 0x499   :  { %2429 = vst [vmem:[%s4854_s9 + $0xc8] sm:$0xff] %v2387_v54 }
 0x49e   :  { %v2389_v10 = vpop.f32.mrf.mxu1 }
 0x49f   :  { %v2390_v23 = vadd.f32 %v4701_v11, %v2389_v10 }
 0x4a1   :  { %2430 = vst [vmem:[%s4854_s9 + $0xd0] sm:$0xff] %v2390_v23 }
 0x4a6   :  { %v2391_v45 = vpop.f32.mrf.mxu1 }
 0x4a7   :  { %v2392_v39 = vadd.f32 %v4701_v11, %v2391_v45 }
 0x4a9   :  { %2431 = vst [vmem:[%s4854_s9 + $0xd8] sm:$0xff] %v2392_v39 }
 0x4ae   :  { %v2394_v35 = vpop.f32.mrf.mxu1 }
 0x4af   :  { %v2395_v27 = vadd.f32 %v4701_v11, %v2394_v35 }
 0x4b1   :  { %2432 = vst [vmem:[%s4854_s9 + $0xe0] sm:$0xff] %v2395_v27 }
 0x4b6   :  { %v2396_v26 = vpop.f32.mrf.mxu1 }
 0x4b7   :  { %v2397_v52 = vadd.f32 %v4701_v11, %v2396_v26 }
 0x4b9   :  { %2433 = vst [vmem:[%s4854_s9 + $0xe8] sm:$0xff] %v2397_v52 }
 0x4be   :  { %v2399_v1 = vpop.f32.mrf.mxu1 }
 0x4bf   :  { %v2400_v34 = vadd.f32 %v4701_v11, %v2399_v1 }
 0x4c1   :  { %2434 = vst [vmem:[%s4854_s9 + $0xf0] sm:$0xff] %v2400_v34 }
 0x4c6   :  { %v2401_v13 = vpop.f32.mrf.mxu1 }
 0x4c7   :  { %v2402_v12 = vadd.f32 %v4701_v11, %v2401_v13 }
 0x4c9   :  { %2435 = vst [vmem:[%s4854_s9 + $0xf8] sm:$0xff] %v2402_v12 }

</bundles_post_ra>
